<compile_context>
chip_gen: v7x
topology: tpu7x:2x2x1
jax: 0.10.0
libtpu: 0.0.40
codegen_flags: <defaults>
</compile_context>

<pallas_src>
import functools
import math

import jax
import jax.numpy as jnp
from jax.experimental import pallas as pl
from jax.experimental.pallas import tpu as pltpu

VMEM = pltpu.MemorySpace.VMEM
MXU_DTYPE = jnp.bfloat16   # native MXU path on v5e/v6e/v7x; accumulate in f32


# ----------------------------- fused Pallas kernel ------------------------------


def _layer_norm(x, g, b, eps):
    mu = jnp.mean(x, axis=-1, keepdims=True)
    xc = x - mu
    var = jnp.mean(xc * xc, axis=-1, keepdims=True)
    return xc * jax.lax.rsqrt(var + eps) * g + b


def _gelu(y):
    # TODO(synk): HF BertIntermediate default is the exact erf GELU; tanh approx used here.
    return 0.5 * y * (1.0 + jnp.tanh(0.7978845608028654 * (y + 0.044715 * y * y * y)))


def fused_forward_kernel(
    x_ref,        # (B*S, hidden)  f32  embeddings sum (pre-LN)
    mask_ref,     # (B, S)         f32  additive attention mask (0 / -1e4)
    emb_ln_ref,   # (2, hidden)    f32  [gamma; beta]
    wqkv_ref,     # (L, hidden, 3*hidden)  bf16
    bqkv_ref,     # (L, 1, 3*hidden)       f32
    wo_ref,       # (L, hidden, hidden)    bf16
    bo_ref,       # (L, 1, hidden)         f32
    ln1_ref,      # (L, 2, hidden)         f32
    w1_ref,       # (L, hidden, inter)     bf16
    b1_ref,       # (L, 1, inter)          f32
    w2_ref,       # (L, inter, hidden)     bf16
    b2_ref,       # (L, 1, hidden)         f32
    ln2_ref,      # (L, 2, hidden)         f32
    wp_ref,       # (hidden, hidden)       bf16  pooler
    bp_ref,       # (1, hidden)            f32
    drop_ref,     # (B, hidden)            f32  precomputed dropout keep/scale mask
    wout_ref,     # (hidden, n_classes)    bf16
    bout_ref,     # (1, n_classes)         f32
    o_ref,        # (B, n_classes)         f32
    *, n_layers, n_heads, batch, seq, hidden, eps, scale,
):
    dh = hidden // n_heads

    x = x_ref[...]                                     # f32, stays f32 on the VPU path
    emb_ln = emb_ln_ref[...]
    x = _layer_norm(x, emb_ln[0:1, :], emb_ln[1:2, :], eps)

    mask_b = mask_ref[...][:, None, :]                 # (B, 1, S) additive, over key positions

    for l in range(n_layers):                          # static unroll (L=2); weights indexed statically
        # ---- fused QKV projection: one (B*S, hidden) @ (hidden, 3*hidden) bf16 matmul ----
        qkv = jnp.dot(x.astype(MXU_DTYPE), wqkv_ref[l],
                      preferred_element_type=jnp.float32) + bqkv_ref[l]
        # split Q/K/V and expose the batch dim: (B, S, hidden); bf16 only for the MXU einsums
        q = qkv[:, 0:hidden].reshape(batch, seq, hidden).astype(MXU_DTYPE)
        k = qkv[:, hidden:2 * hidden].reshape(batch, seq, hidden).astype(MXU_DTYPE)
        v = qkv[:, 2 * hidden:3 * hidden].reshape(batch, seq, hidden).astype(MXU_DTYPE)

        # ---- multi-head attention: batched over B with 3-D einsums, loop only over heads ----
        heads = []
        for h in range(n_heads):
            c0 = h * dh
            qh = q[:, :, c0:c0 + dh]                   # (B, S, dh)
            kh = k[:, :, c0:c0 + dh]
            vh = v[:, :, c0:c0 + dh]
            s = jnp.einsum('bqd,bkd->bqk', qh, kh,
                           preferred_element_type=jnp.float32) * scale
            s = s + mask_b
            s = s - jnp.max(s, axis=-1, keepdims=True)
            e = jnp.exp(s)                             # f32 softmax (VPU/EUP)
            p = e * pl.reciprocal(jnp.sum(e, axis=-1, keepdims=True), approx=True)
            heads.append(jnp.einsum('bqk,bkd->bqd', p.astype(MXU_DTYPE), vh,
                                    preferred_element_type=jnp.float32))
        ctx = jnp.concatenate(heads, axis=-1).reshape(batch * seq, hidden)   # (B*S, hidden)

        # ---- attention output dense + residual + LayerNorm ----
        attn_out = jnp.dot(ctx.astype(MXU_DTYPE), wo_ref[l],
                           preferred_element_type=jnp.float32) + bo_ref[l]
        ln1 = ln1_ref[l]
        x = _layer_norm(attn_out + x, ln1[0:1, :], ln1[1:2, :], eps)

        # ---- FFN: gelu(x @ w1 + b1) @ w2 + b2, residual + LayerNorm ----
        h1 = _gelu(jnp.dot(x.astype(MXU_DTYPE), w1_ref[l],
                           preferred_element_type=jnp.float32) + b1_ref[l])
        ff = jnp.dot(h1.astype(MXU_DTYPE), w2_ref[l],
                     preferred_element_type=jnp.float32) + b2_ref[l]
        ln2 = ln2_ref[l]
        x = _layer_norm(ff + x, ln2[0:1, :], ln2[1:2, :], eps)

    # ---- BERT pooler on [CLS] rows + dropout + classifier, all still resident ----
    cls = x.reshape(batch, seq, hidden)[:, 0, :]       # (B, hidden): sublane-aligned row pick
    pooled = jnp.tanh(jnp.dot(cls.astype(MXU_DTYPE), wp_ref[...],
                              preferred_element_type=jnp.float32) + bp_ref[...])
    dropped = pooled * drop_ref[...]
    # TODO(synk): pad n_classes to a multiple of 128 for lane-dense stores at production sizes.
    logits = (jnp.dot(dropped.astype(MXU_DTYPE), wout_ref[...],
                      preferred_element_type=jnp.float32) + bout_ref[...])
    o_ref[...] = logits.astype(o_ref.dtype)


# ------------------------------ model / wrapper ------------------------------


def init_params(key, *, vocab=100, max_pos=16, hidden=32, n_layers=2,
                intermediate=64, n_classes=2):
    def nrm(k, shape, scale=0.02):
        return scale * jax.random.normal(k, shape, dtype=jnp.float32)

    keys = iter(jax.random.split(key, 64))
    params = {
        "word_emb": nrm(next(keys), (vocab, hidden)),
        "pos_emb": nrm(next(keys), (max_pos, hidden)),
        "type_emb": nrm(next(keys), (2, hidden)),
        "emb_ln_g": jnp.ones((hidden,), jnp.float32),
        "emb_ln_b": jnp.zeros((hidden,), jnp.float32),
        "layers": [],
        "wp": nrm(next(keys), (hidden, hidden)),
        "bp": jnp.zeros((hidden,), jnp.float32),
        "w_out": nrm(next(keys), (hidden, n_classes)),
        "b_out": jnp.zeros((n_classes,), jnp.float32),
    }
    for _ in range(n_layers):
        layer = {
            "wq": nrm(next(keys), (hidden, hidden)), "bq": jnp.zeros((hidden,), jnp.float32),
            "wk": nrm(next(keys), (hidden, hidden)), "bk": jnp.zeros((hidden,), jnp.float32),
            "wv": nrm(next(keys), (hidden, hidden)), "bv": jnp.zeros((hidden,), jnp.float32),
            "wo": nrm(next(keys), (hidden, hidden)), "bo": jnp.zeros((hidden,), jnp.float32),
            "ln1_g": jnp.ones((hidden,), jnp.float32), "ln1_b": jnp.zeros((hidden,), jnp.float32),
            "w1": nrm(next(keys), (hidden, intermediate)), "b1": jnp.zeros((intermediate,), jnp.float32),
            "w2": nrm(next(keys), (intermediate, hidden)), "b2": jnp.zeros((hidden,), jnp.float32),
            "ln2_g": jnp.ones((hidden,), jnp.float32), "ln2_b": jnp.zeros((hidden,), jnp.float32),
        }
        params["layers"].append(layer)
    return params


def stack_and_cast_params(params, mxu_dtype=MXU_DTYPE):
    """Hoisted out of the forward pass: build stacked / pre-cast weight tensors ONCE."""
    lyr = params["layers"]
    return {
        "word_emb": params["word_emb"],
        "pos_emb": params["pos_emb"],
        "type_emb": params["type_emb"],
        "emb_ln": jnp.stack([params["emb_ln_g"], params["emb_ln_b"]]),
        "wqkv": jnp.stack([jnp.concatenate([l["wq"], l["wk"], l["wv"]], axis=1)
                           for l in lyr]).astype(mxu_dtype),
        "bqkv": jnp.stack([jnp.concatenate([l["bq"], l["bk"], l["bv"]])[None, :] for l in lyr]),
        "wo": jnp.stack([l["wo"] for l in lyr]).astype(mxu_dtype),
        "bo": jnp.stack([l["bo"][None, :] for l in lyr]),
        "ln1": jnp.stack([jnp.stack([l["ln1_g"], l["ln1_b"]]) for l in lyr]),
        "w1": jnp.stack([l["w1"] for l in lyr]).astype(mxu_dtype),
        "b1": jnp.stack([l["b1"][None, :] for l in lyr]),
        "w2": jnp.stack([l["w2"] for l in lyr]).astype(mxu_dtype),
        "b2": jnp.stack([l["b2"][None, :] for l in lyr]),
        "ln2": jnp.stack([jnp.stack([l["ln2_g"], l["ln2_b"]]) for l in lyr]),
        "wp": params["wp"].astype(mxu_dtype),
        "bp": params["bp"][None, :],
        "w_out": params["w_out"].astype(mxu_dtype),
        "b_out": params["b_out"][None, :],
    }


@functools.partial(jax.jit, static_argnames=("n_heads", "training", "p_drop"))
def is_similar_classifier_forward(stacked, input_ids, attention_mask, dropout_key, *,
                                  n_heads=2, training=True, p_drop=0.3):
    B, S = input_ids.shape
    hidden = stacked["word_emb"].shape[1]
    n_layers = stacked["wqkv"].shape[0]
    n_classes = stacked["w_out"].shape[1]
    dh = hidden // n_heads
    scale = 1.0 / math.sqrt(dh)

    # --- embeddings: table gathers stay in plain JAX (glue feeding the fused kernel) ---
    x = (stacked["word_emb"][input_ids]
         + stacked["pos_emb"][:S][None, :, :]
         + stacked["type_emb"][0][None, None, :])
    x2 = x.reshape(B * S, hidden).astype(jnp.float32)

    mask_add = (1.0 - attention_mask.astype(jnp.float32)) * -10000.0        # (B, S)

    # --- dropout keep/scale mask generated with jax.random (no in-kernel PRNG) ---
    if training and p_drop > 0.0:
        keep = jax.random.bernoulli(dropout_key, 1.0 - p_drop, (B, hidden))
        drop_scale = keep.astype(jnp.float32) / (1.0 - p_drop)
    else:
        drop_scale = jnp.ones((B, hidden), jnp.float32)

    kernel = functools.partial(
        fused_forward_kernel,
        n_layers=int(n_layers), n_heads=n_heads, batch=B, seq=S,
        hidden=hidden, eps=1e-12, scale=scale)

    vspec = pl.BlockSpec(memory_space=VMEM)
    # TODO(synk): at real model size, set pltpu.CompilerParams(vmem_limit_bytes=...) per
    # generation and add grid axes (parallel over rows, arbitrary over layers).
    return pl.pallas_call(
        kernel,
        out_shape=jax.ShapeDtypeStruct((B, n_classes), jnp.float32),
        in_specs=[vspec] * 18,
        out_specs=vspec,
    )(x2, mask_add, stacked["emb_ln"],
      stacked["wqkv"], stacked["bqkv"], stacked["wo"], stacked["bo"], stacked["ln1"],
      stacked["w1"], stacked["b1"], stacked["w2"], stacked["b2"], stacked["ln2"],
      stacked["wp"], stacked["bp"], drop_scale,
      stacked["w_out"], stacked["b_out"])


# ------------------------------ main -----------------------------------------


if __name__ == "__main__":
    key = jax.random.PRNGKey(0)
    k_param, k_ids, k_drop = jax.random.split(key, 3)

    B, S, VOCAB, N_CLASSES = 2, 8, 100, 2
    params = init_params(k_param, vocab=VOCAB, max_pos=16, hidden=32,
                         n_layers=2, intermediate=64, n_classes=N_CLASSES)
    stacked = stack_and_cast_params(params)   # hoisted: built once, reused every forward

    input_ids = jax.random.randint(k_ids, (B, S), 0, VOCAB, dtype=jnp.int32)
    attention_mask = jnp.array(
        [[1, 1, 1, 1, 1, 1, 1, 1],
         [1, 1, 1, 1, 1, 0, 0, 0]], dtype=jnp.int32)

    logits = is_similar_classifier_forward(
        stacked, input_ids, attention_mask, k_drop,
        n_heads=2, training=True)
    logits = jax.block_until_ready(logits)

    assert logits.shape == (B, N_CLASSES)
    assert bool(jnp.all(jnp.isfinite(logits)))
    print("KERNEL_OK")
</pallas_src>

<mosaic_0001>
module attributes {stable_mosaic.version = 11 : i64} {
  func.func @fused_forward_kernel(%arg0: memref<16x32xf32, #tpu.memory_space<vmem>>, %arg1: memref<2x8xf32, #tpu.memory_space<vmem>>, %arg2: memref<2x32xf32, #tpu.memory_space<vmem>>, %arg3: memref<2x32x96xbf16, #tpu.memory_space<vmem>>, %arg4: memref<2x1x96xf32, #tpu.memory_space<vmem>>, %arg5: memref<2x32x32xbf16, #tpu.memory_space<vmem>>, %arg6: memref<2x1x32xf32, #tpu.memory_space<vmem>>, %arg7: memref<2x2x32xf32, #tpu.memory_space<vmem>>, %arg8: memref<2x32x64xbf16, #tpu.memory_space<vmem>>, %arg9: memref<2x1x64xf32, #tpu.memory_space<vmem>>, %arg10: memref<2x64x32xbf16, #tpu.memory_space<vmem>>, %arg11: memref<2x1x32xf32, #tpu.memory_space<vmem>>, %arg12: memref<2x2x32xf32, #tpu.memory_space<vmem>>, %arg13: memref<32x32xbf16, #tpu.memory_space<vmem>>, %arg14: memref<1x32xf32, #tpu.memory_space<vmem>>, %arg15: memref<2x32xf32, #tpu.memory_space<vmem>>, %arg16: memref<32x2xbf16, #tpu.memory_space<vmem>>, %arg17: memref<1x2xf32, #tpu.memory_space<vmem>>, %arg18: memref<2x2xf32, #tpu.memory_space<vmem>>) attributes {dimension_semantics = [], scalar_prefetch = 0 : i64, scratch_operands = 0 : i64, tpu.core_type = #tpu.core_type<tc>} {
    %c0 = arith.constant 0 : index
    %c0_0 = arith.constant 0 : index
    %0 = vector.load %arg0[%c0, %c0_0] : memref<16x32xf32, #tpu.memory_space<vmem>>, vector<16x32xf32>
    %c0_1 = arith.constant 0 : index
    %c0_2 = arith.constant 0 : index
    %1 = vector.load %arg2[%c0_1, %c0_2] : memref<2x32xf32, #tpu.memory_space<vmem>>, vector<2x32xf32>
    %2 = vector.extract_strided_slice %1 {offsets = [0, 0], sizes = [1, 32], strides = [1, 1]} : vector<2x32xf32> to vector<1x32xf32>
    %3 = vector.extract_strided_slice %1 {offsets = [1, 0], sizes = [1, 32], strides = [1, 1]} : vector<2x32xf32> to vector<1x32xf32>
    %cst = arith.constant dense<0.000000e+00> : vector<16xf32>
    %4 = vector.multi_reduction <add>, %0, %cst [1] : vector<16x32xf32> to vector<16xf32>
    %5 = vector.shape_cast %4 : vector<16xf32> to vector<16x1xf32>
    %cst_3 = arith.constant 3.200000e+01 : f32
    %6 = vector.broadcast %cst_3 : f32 to vector<16x1xf32>
    %7 = arith.divf %5, %6 : vector<16x1xf32>
    %8 = vector.broadcast %7 : vector<16x1xf32> to vector<16x32xf32>
    %9 = arith.subf %0, %8 : vector<16x32xf32>
    %10 = arith.mulf %9, %9 : vector<16x32xf32>
    %cst_4 = arith.constant dense<0.000000e+00> : vector<16xf32>
    %11 = vector.multi_reduction <add>, %10, %cst_4 [1] : vector<16x32xf32> to vector<16xf32>
    %12 = vector.shape_cast %11 : vector<16xf32> to vector<16x1xf32>
    %cst_5 = arith.constant 3.200000e+01 : f32
    %13 = vector.broadcast %cst_5 : f32 to vector<16x1xf32>
    %14 = arith.divf %12, %13 : vector<16x1xf32>
    %cst_6 = arith.constant 9.99999996E-13 : f32
    %15 = vector.broadcast %cst_6 : f32 to vector<16x1xf32>
    %16 = arith.addf %14, %15 : vector<16x1xf32>
    %17 = math.rsqrt %16 : vector<16x1xf32>
    %18 = vector.broadcast %17 : vector<16x1xf32> to vector<16x32xf32>
    %19 = arith.mulf %9, %18 : vector<16x32xf32>
    %20 = vector.broadcast %2 : vector<1x32xf32> to vector<16x32xf32>
    %21 = arith.mulf %19, %20 : vector<16x32xf32>
    %22 = vector.broadcast %3 : vector<1x32xf32> to vector<16x32xf32>
    %23 = arith.addf %21, %22 : vector<16x32xf32>
    %c0_7 = arith.constant 0 : index
    %c0_8 = arith.constant 0 : index
    %24 = vector.load %arg1[%c0_7, %c0_8] : memref<2x8xf32, #tpu.memory_space<vmem>>, vector<2x8xf32>
    %25 = vector.shape_cast %24 : vector<2x8xf32> to vector<2x1x8xf32>
    %26 = arith.truncf %23 : vector<16x32xf32> to vector<16x32xbf16>
    %c0_9 = arith.constant 0 : index
    %c0_10 = arith.constant 0 : index
    %c0_11 = arith.constant 0 : index
    %27 = vector.load %arg3[%c0_9, %c0_10, %c0_11] : memref<2x32x96xbf16, #tpu.memory_space<vmem>>, vector<1x32x96xbf16>
    %28 = vector.shape_cast %27 : vector<1x32x96xbf16> to vector<32x96xbf16>
    %cst_12 = arith.constant dense<0.000000e+00> : vector<16x96xf32>
    %29 = tpu.matmul %26, %28, %cst_12 {dimension_numbers = #tpu.dot_dimension_numbers<[1], [0], [0], [1], [0, 0, 1, 1], [], []>} : vector<16x32xbf16>, vector<32x96xbf16>, vector<16x96xf32> -> vector<16x96xf32>
    %c0_13 = arith.constant 0 : index
    %c0_14 = arith.constant 0 : index
    %c0_15 = arith.constant 0 : index
    %30 = vector.load %arg4[%c0_13, %c0_14, %c0_15] : memref<2x1x96xf32, #tpu.memory_space<vmem>>, vector<1x1x96xf32>
    %31 = vector.shape_cast %30 : vector<1x1x96xf32> to vector<1x96xf32>
    %32 = vector.broadcast %31 : vector<1x96xf32> to vector<16x96xf32>
    %33 = arith.addf %29, %32 : vector<16x96xf32>
    %34 = vector.extract_strided_slice %33 {offsets = [0, 0], sizes = [16, 32], strides = [1, 1]} : vector<16x96xf32> to vector<16x32xf32>
    %35 = vector.shape_cast %34 : vector<16x32xf32> to vector<2x8x32xf32>
    %36 = arith.truncf %35 : vector<2x8x32xf32> to vector<2x8x32xbf16>
    %37 = vector.extract_strided_slice %33 {offsets = [0, 32], sizes = [16, 32], strides = [1, 1]} : vector<16x96xf32> to vector<16x32xf32>
    %38 = vector.shape_cast %37 : vector<16x32xf32> to vector<2x8x32xf32>
    %39 = arith.truncf %38 : vector<2x8x32xf32> to vector<2x8x32xbf16>
    %40 = vector.extract_strided_slice %33 {offsets = [0, 64], sizes = [16, 32], strides = [1, 1]} : vector<16x96xf32> to vector<16x32xf32>
    %41 = vector.shape_cast %40 : vector<16x32xf32> to vector<2x8x32xf32>
    %42 = arith.truncf %41 : vector<2x8x32xf32> to vector<2x8x32xbf16>
    %43 = vector.extract_strided_slice %36 {offsets = [0, 0, 0], sizes = [2, 8, 16], strides = [1, 1, 1]} : vector<2x8x32xbf16> to vector<2x8x16xbf16>
    %44 = vector.extract_strided_slice %39 {offsets = [0, 0, 0], sizes = [2, 8, 16], strides = [1, 1, 1]} : vector<2x8x32xbf16> to vector<2x8x16xbf16>
    %45 = vector.extract_strided_slice %42 {offsets = [0, 0, 0], sizes = [2, 8, 16], strides = [1, 1, 1]} : vector<2x8x32xbf16> to vector<2x8x16xbf16>
    "tpu.trace_start"() <{level = 10 : i32, message = "bqd,bkd->bqk"}> : () -> ()
    %cst_16 = arith.constant dense<0.000000e+00> : vector<2x8x8xf32>
    %46 = tpu.matmul %43, %44, %cst_16 {dimension_numbers = #tpu.dot_dimension_numbers<[2], [2], [1], [1], [0, 0, 0, 1, 1, 1], [0], [0]>} : vector<2x8x16xbf16>, vector<2x8x16xbf16>, vector<2x8x8xf32> -> vector<2x8x8xf32>
    "tpu.trace_stop"() : () -> ()
    %cst_17 = arith.constant 2.500000e-01 : f32
    %47 = vector.broadcast %cst_17 : f32 to vector<2x8x8xf32>
    %48 = arith.mulf %46, %47 : vector<2x8x8xf32>
    %49 = vector.broadcast %25 : vector<2x1x8xf32> to vector<2x8x8xf32>
    %50 = arith.addf %48, %49 : vector<2x8x8xf32>
    %cst_18 = arith.constant dense<0xFF800000> : vector<2x8xf32>
    %51 = vector.multi_reduction <maximumf>, %50, %cst_18 [2] : vector<2x8x8xf32> to vector<2x8xf32>
    %52 = vector.shape_cast %51 : vector<2x8xf32> to vector<2x8x1xf32>
    %53 = vector.broadcast %52 : vector<2x8x1xf32> to vector<2x8x8xf32>
    %54 = arith.subf %50, %53 : vector<2x8x8xf32>
    %55 = math.exp %54 : vector<2x8x8xf32>
    %cst_19 = arith.constant dense<0.000000e+00> : vector<2x8xf32>
    %56 = vector.multi_reduction <add>, %55, %cst_19 [2] : vector<2x8x8xf32> to vector<2x8xf32>
    %57 = vector.shape_cast %56 : vector<2x8xf32> to vector<2x8x1xf32>
    %58 = tpu.reciprocal %57 {approx = true} : vector<2x8x1xf32> -> vector<2x8x1xf32>
    %59 = vector.broadcast %58 : vector<2x8x1xf32> to vector<2x8x8xf32>
    %60 = arith.mulf %55, %59 : vector<2x8x8xf32>
    %61 = arith.truncf %60 : vector<2x8x8xf32> to vector<2x8x8xbf16>
    "tpu.trace_start"() <{level = 10 : i32, message = "bqk,bkd->bqd"}> : () -> ()
    %cst_20 = arith.constant dense<0.000000e+00> : vector<2x8x16xf32>
    %62 = tpu.matmul %61, %45, %cst_20 {dimension_numbers = #tpu.dot_dimension_numbers<[2], [1], [1], [2], [0, 0, 0, 1, 1, 2], [0], [0]>} : vector<2x8x8xbf16>, vector<2x8x16xbf16>, vector<2x8x16xf32> -> vector<2x8x16xf32>
    "tpu.trace_stop"() : () -> ()
    %63 = vector.extract_strided_slice %36 {offsets = [0, 0, 16], sizes = [2, 8, 16], strides = [1, 1, 1]} : vector<2x8x32xbf16> to vector<2x8x16xbf16>
    %64 = vector.extract_strided_slice %39 {offsets = [0, 0, 16], sizes = [2, 8, 16], strides = [1, 1, 1]} : vector<2x8x32xbf16> to vector<2x8x16xbf16>
    %65 = vector.extract_strided_slice %42 {offsets = [0, 0, 16], sizes = [2, 8, 16], strides = [1, 1, 1]} : vector<2x8x32xbf16> to vector<2x8x16xbf16>
    "tpu.trace_start"() <{level = 10 : i32, message = "bqd,bkd->bqk"}> : () -> ()
    %cst_21 = arith.constant dense<0.000000e+00> : vector<2x8x8xf32>
    %66 = tpu.matmul %63, %64, %cst_21 {dimension_numbers = #tpu.dot_dimension_numbers<[2], [2], [1], [1], [0, 0, 0, 1, 1, 1], [0], [0]>} : vector<2x8x16xbf16>, vector<2x8x16xbf16>, vector<2x8x8xf32> -> vector<2x8x8xf32>
    "tpu.trace_stop"() : () -> ()
    %cst_22 = arith.constant 2.500000e-01 : f32
    %67 = vector.broadcast %cst_22 : f32 to vector<2x8x8xf32>
    %68 = arith.mulf %66, %67 : vector<2x8x8xf32>
    %69 = vector.broadcast %25 : vector<2x1x8xf32> to vector<2x8x8xf32>
    %70 = arith.addf %68, %69 : vector<2x8x8xf32>
    %cst_23 = arith.constant dense<0xFF800000> : vector<2x8xf32>
    %71 = vector.multi_reduction <maximumf>, %70, %cst_23 [2] : vector<2x8x8xf32> to vector<2x8xf32>
    %72 = vector.shape_cast %71 : vector<2x8xf32> to vector<2x8x1xf32>
    %73 = vector.broadcast %72 : vector<2x8x1xf32> to vector<2x8x8xf32>
    %74 = arith.subf %70, %73 : vector<2x8x8xf32>
    %75 = math.exp %74 : vector<2x8x8xf32>
    %cst_24 = arith.constant dense<0.000000e+00> : vector<2x8xf32>
    %76 = vector.multi_reduction <add>, %75, %cst_24 [2] : vector<2x8x8xf32> to vector<2x8xf32>
    %77 = vector.shape_cast %76 : vector<2x8xf32> to vector<2x8x1xf32>
    %78 = tpu.reciprocal %77 {approx = true} : vector<2x8x1xf32> -> vector<2x8x1xf32>
    %79 = vector.broadcast %78 : vector<2x8x1xf32> to vector<2x8x8xf32>
    %80 = arith.mulf %75, %79 : vector<2x8x8xf32>
    %81 = arith.truncf %80 : vector<2x8x8xf32> to vector<2x8x8xbf16>
    "tpu.trace_start"() <{level = 10 : i32, message = "bqk,bkd->bqd"}> : () -> ()
    %cst_25 = arith.constant dense<0.000000e+00> : vector<2x8x16xf32>
    %82 = tpu.matmul %81, %65, %cst_25 {dimension_numbers = #tpu.dot_dimension_numbers<[2], [1], [1], [2], [0, 0, 0, 1, 1, 2], [0], [0]>} : vector<2x8x8xbf16>, vector<2x8x16xbf16>, vector<2x8x16xf32> -> vector<2x8x16xf32>
    "tpu.trace_stop"() : () -> ()
    %83 = tpu.concatenate %62, %82 in 2 : vector<2x8x16xf32>, vector<2x8x16xf32> -> vector<2x8x32xf32>
    %84 = vector.shape_cast %83 : vector<2x8x32xf32> to vector<16x32xf32>
    %85 = arith.truncf %84 : vector<16x32xf32> to vector<16x32xbf16>
    %c0_26 = arith.constant 0 : index
    %c0_27 = arith.constant 0 : index
    %c0_28 = arith.constant 0 : index
    %86 = vector.load %arg5[%c0_26, %c0_27, %c0_28] : memref<2x32x32xbf16, #tpu.memory_space<vmem>>, vector<1x32x32xbf16>
    %87 = vector.shape_cast %86 : vector<1x32x32xbf16> to vector<32x32xbf16>
    %cst_29 = arith.constant dense<0.000000e+00> : vector<16x32xf32>
    %88 = tpu.matmul %85, %87, %cst_29 {dimension_numbers = #tpu.dot_dimension_numbers<[1], [0], [0], [1], [0, 0, 1, 1], [], []>} : vector<16x32xbf16>, vector<32x32xbf16>, vector<16x32xf32> -> vector<16x32xf32>
    %c0_30 = arith.constant 0 : index
    %c0_31 = arith.constant 0 : index
    %c0_32 = arith.constant 0 : index
    %89 = vector.load %arg6[%c0_30, %c0_31, %c0_32] : memref<2x1x32xf32, #tpu.memory_space<vmem>>, vector<1x1x32xf32>
    %90 = vector.shape_cast %89 : vector<1x1x32xf32> to vector<1x32xf32>
    %91 = vector.broadcast %90 : vector<1x32xf32> to vector<16x32xf32>
    %92 = arith.addf %88, %91 : vector<16x32xf32>
    %c0_33 = arith.constant 0 : index
    %c0_34 = arith.constant 0 : index
    %c0_35 = arith.constant 0 : index
    %93 = vector.load %arg7[%c0_33, %c0_34, %c0_35] : memref<2x2x32xf32, #tpu.memory_space<vmem>>, vector<1x2x32xf32>
    %94 = vector.shape_cast %93 : vector<1x2x32xf32> to vector<2x32xf32>
    %95 = arith.addf %92, %23 : vector<16x32xf32>
    %96 = vector.extract_strided_slice %94 {offsets = [0, 0], sizes = [1, 32], strides = [1, 1]} : vector<2x32xf32> to vector<1x32xf32>
    %97 = vector.extract_strided_slice %94 {offsets = [1, 0], sizes = [1, 32], strides = [1, 1]} : vector<2x32xf32> to vector<1x32xf32>
    %cst_36 = arith.constant dense<0.000000e+00> : vector<16xf32>
    %98 = vector.multi_reduction <add>, %95, %cst_36 [1] : vector<16x32xf32> to vector<16xf32>
    %99 = vector.shape_cast %98 : vector<16xf32> to vector<16x1xf32>
    %cst_37 = arith.constant 3.200000e+01 : f32
    %100 = vector.broadcast %cst_37 : f32 to vector<16x1xf32>
    %101 = arith.divf %99, %100 : vector<16x1xf32>
    %102 = vector.broadcast %101 : vector<16x1xf32> to vector<16x32xf32>
    %103 = arith.subf %95, %102 : vector<16x32xf32>
    %104 = arith.mulf %103, %103 : vector<16x32xf32>
    %cst_38 = arith.constant dense<0.000000e+00> : vector<16xf32>
    %105 = vector.multi_reduction <add>, %104, %cst_38 [1] : vector<16x32xf32> to vector<16xf32>
    %106 = vector.shape_cast %105 : vector<16xf32> to vector<16x1xf32>
    %cst_39 = arith.constant 3.200000e+01 : f32
    %107 = vector.broadcast %cst_39 : f32 to vector<16x1xf32>
    %108 = arith.divf %106, %107 : vector<16x1xf32>
    %cst_40 = arith.constant 9.99999996E-13 : f32
    %109 = vector.broadcast %cst_40 : f32 to vector<16x1xf32>
    %110 = arith.addf %108, %109 : vector<16x1xf32>
    %111 = math.rsqrt %110 : vector<16x1xf32>
    %112 = vector.broadcast %111 : vector<16x1xf32> to vector<16x32xf32>
    %113 = arith.mulf %103, %112 : vector<16x32xf32>
    %114 = vector.broadcast %96 : vector<1x32xf32> to vector<16x32xf32>
    %115 = arith.mulf %113, %114 : vector<16x32xf32>
    %116 = vector.broadcast %97 : vector<1x32xf32> to vector<16x32xf32>
    %117 = arith.addf %115, %116 : vector<16x32xf32>
    %118 = arith.truncf %117 : vector<16x32xf32> to vector<16x32xbf16>
    %c0_41 = arith.constant 0 : index
    %c0_42 = arith.constant 0 : index
    %c0_43 = arith.constant 0 : index
    %119 = vector.load %arg8[%c0_41, %c0_42, %c0_43] : memref<2x32x64xbf16, #tpu.memory_space<vmem>>, vector<1x32x64xbf16>
    %120 = vector.shape_cast %119 : vector<1x32x64xbf16> to vector<32x64xbf16>
    %cst_44 = arith.constant dense<0.000000e+00> : vector<16x64xf32>
    %121 = tpu.matmul %118, %120, %cst_44 {dimension_numbers = #tpu.dot_dimension_numbers<[1], [0], [0], [1], [0, 0, 1, 1], [], []>} : vector<16x32xbf16>, vector<32x64xbf16>, vector<16x64xf32> -> vector<16x64xf32>
    %c0_45 = arith.constant 0 : index
    %c0_46 = arith.constant 0 : index
    %c0_47 = arith.constant 0 : index
    %122 = vector.load %arg9[%c0_45, %c0_46, %c0_47] : memref<2x1x64xf32, #tpu.memory_space<vmem>>, vector<1x1x64xf32>
    %123 = vector.shape_cast %122 : vector<1x1x64xf32> to vector<1x64xf32>
    %124 = vector.broadcast %123 : vector<1x64xf32> to vector<16x64xf32>
    %125 = arith.addf %121, %124 : vector<16x64xf32>
    %cst_48 = arith.constant 5.000000e-01 : f32
    %126 = vector.broadcast %cst_48 : f32 to vector<16x64xf32>
    %127 = arith.mulf %126, %125 : vector<16x64xf32>
    %cst_49 = arith.constant 4.471500e-02 : f32
    %128 = vector.broadcast %cst_49 : f32 to vector<16x64xf32>
    %129 = arith.mulf %128, %125 : vector<16x64xf32>
    %130 = arith.mulf %129, %125 : vector<16x64xf32>
    %131 = arith.mulf %130, %125 : vector<16x64xf32>
    %132 = arith.addf %125, %131 : vector<16x64xf32>
    %cst_50 = arith.constant 0.797884583 : f32
    %133 = vector.broadcast %cst_50 : f32 to vector<16x64xf32>
    %134 = arith.mulf %133, %132 : vector<16x64xf32>
    %135 = math.tanh %134 : vector<16x64xf32>
    %cst_51 = arith.constant 1.000000e+00 : f32
    %136 = vector.broadcast %cst_51 : f32 to vector<16x64xf32>
    %137 = arith.addf %136, %135 : vector<16x64xf32>
    %138 = arith.mulf %127, %137 : vector<16x64xf32>
    %139 = arith.truncf %138 : vector<16x64xf32> to vector<16x64xbf16>
    %c0_52 = arith.constant 0 : index
    %c0_53 = arith.constant 0 : index
    %c0_54 = arith.constant 0 : index
    %140 = vector.load %arg10[%c0_52, %c0_53, %c0_54] : memref<2x64x32xbf16, #tpu.memory_space<vmem>>, vector<1x64x32xbf16>
    %141 = vector.shape_cast %140 : vector<1x64x32xbf16> to vector<64x32xbf16>
    %cst_55 = arith.constant dense<0.000000e+00> : vector<16x32xf32>
    %142 = tpu.matmul %139, %141, %cst_55 {dimension_numbers = #tpu.dot_dimension_numbers<[1], [0], [0], [1], [0, 0, 1, 1], [], []>} : vector<16x64xbf16>, vector<64x32xbf16>, vector<16x32xf32> -> vector<16x32xf32>
    %c0_56 = arith.constant 0 : index
    %c0_57 = arith.constant 0 : index
    %c0_58 = arith.constant 0 : index
    %143 = vector.load %arg11[%c0_56, %c0_57, %c0_58] : memref<2x1x32xf32, #tpu.memory_space<vmem>>, vector<1x1x32xf32>
    %144 = vector.shape_cast %143 : vector<1x1x32xf32> to vector<1x32xf32>
    %145 = vector.broadcast %144 : vector<1x32xf32> to vector<16x32xf32>
    %146 = arith.addf %142, %145 : vector<16x32xf32>
    %c0_59 = arith.constant 0 : index
    %c0_60 = arith.constant 0 : index
    %c0_61 = arith.constant 0 : index
    %147 = vector.load %arg12[%c0_59, %c0_60, %c0_61] : memref<2x2x32xf32, #tpu.memory_space<vmem>>, vector<1x2x32xf32>
    %148 = vector.shape_cast %147 : vector<1x2x32xf32> to vector<2x32xf32>
    %149 = arith.addf %146, %117 : vector<16x32xf32>
    %150 = vector.extract_strided_slice %148 {offsets = [0, 0], sizes = [1, 32], strides = [1, 1]} : vector<2x32xf32> to vector<1x32xf32>
    %151 = vector.extract_strided_slice %148 {offsets = [1, 0], sizes = [1, 32], strides = [1, 1]} : vector<2x32xf32> to vector<1x32xf32>
    %cst_62 = arith.constant dense<0.000000e+00> : vector<16xf32>
    %152 = vector.multi_reduction <add>, %149, %cst_62 [1] : vector<16x32xf32> to vector<16xf32>
    %153 = vector.shape_cast %152 : vector<16xf32> to vector<16x1xf32>
    %cst_63 = arith.constant 3.200000e+01 : f32
    %154 = vector.broadcast %cst_63 : f32 to vector<16x1xf32>
    %155 = arith.divf %153, %154 : vector<16x1xf32>
    %156 = vector.broadcast %155 : vector<16x1xf32> to vector<16x32xf32>
    %157 = arith.subf %149, %156 : vector<16x32xf32>
    %158 = arith.mulf %157, %157 : vector<16x32xf32>
    %cst_64 = arith.constant dense<0.000000e+00> : vector<16xf32>
    %159 = vector.multi_reduction <add>, %158, %cst_64 [1] : vector<16x32xf32> to vector<16xf32>
    %160 = vector.shape_cast %159 : vector<16xf32> to vector<16x1xf32>
    %cst_65 = arith.constant 3.200000e+01 : f32
    %161 = vector.broadcast %cst_65 : f32 to vector<16x1xf32>
    %162 = arith.divf %160, %161 : vector<16x1xf32>
    %cst_66 = arith.constant 9.99999996E-13 : f32
    %163 = vector.broadcast %cst_66 : f32 to vector<16x1xf32>
    %164 = arith.addf %162, %163 : vector<16x1xf32>
    %165 = math.rsqrt %164 : vector<16x1xf32>
    %166 = vector.broadcast %165 : vector<16x1xf32> to vector<16x32xf32>
    %167 = arith.mulf %157, %166 : vector<16x32xf32>
    %168 = vector.broadcast %150 : vector<1x32xf32> to vector<16x32xf32>
    %169 = arith.mulf %167, %168 : vector<16x32xf32>
    %170 = vector.broadcast %151 : vector<1x32xf32> to vector<16x32xf32>
    %171 = arith.addf %169, %170 : vector<16x32xf32>
    %172 = arith.truncf %171 : vector<16x32xf32> to vector<16x32xbf16>
    %c1 = arith.constant 1 : index
    %c0_67 = arith.constant 0 : index
    %c0_68 = arith.constant 0 : index
    %173 = vector.load %arg3[%c1, %c0_67, %c0_68] : memref<2x32x96xbf16, #tpu.memory_space<vmem>>, vector<1x32x96xbf16>
    %174 = vector.shape_cast %173 : vector<1x32x96xbf16> to vector<32x96xbf16>
    %cst_69 = arith.constant dense<0.000000e+00> : vector<16x96xf32>
    %175 = tpu.matmul %172, %174, %cst_69 {dimension_numbers = #tpu.dot_dimension_numbers<[1], [0], [0], [1], [0, 0, 1, 1], [], []>} : vector<16x32xbf16>, vector<32x96xbf16>, vector<16x96xf32> -> vector<16x96xf32>
    %c1_70 = arith.constant 1 : index
    %c0_71 = arith.constant 0 : index
    %c0_72 = arith.constant 0 : index
    %176 = vector.load %arg4[%c1_70, %c0_71, %c0_72] : memref<2x1x96xf32, #tpu.memory_space<vmem>>, vector<1x1x96xf32>
    %177 = vector.shape_cast %176 : vector<1x1x96xf32> to vector<1x96xf32>
    %178 = vector.broadcast %177 : vector<1x96xf32> to vector<16x96xf32>
    %179 = arith.addf %175, %178 : vector<16x96xf32>
    %180 = vector.extract_strided_slice %179 {offsets = [0, 0], sizes = [16, 32], strides = [1, 1]} : vector<16x96xf32> to vector<16x32xf32>
    %181 = vector.shape_cast %180 : vector<16x32xf32> to vector<2x8x32xf32>
    %182 = arith.truncf %181 : vector<2x8x32xf32> to vector<2x8x32xbf16>
    %183 = vector.extract_strided_slice %179 {offsets = [0, 32], sizes = [16, 32], strides = [1, 1]} : vector<16x96xf32> to vector<16x32xf32>
    %184 = vector.shape_cast %183 : vector<16x32xf32> to vector<2x8x32xf32>
    %185 = arith.truncf %184 : vector<2x8x32xf32> to vector<2x8x32xbf16>
    %186 = vector.extract_strided_slice %179 {offsets = [0, 64], sizes = [16, 32], strides = [1, 1]} : vector<16x96xf32> to vector<16x32xf32>
    %187 = vector.shape_cast %186 : vector<16x32xf32> to vector<2x8x32xf32>
    %188 = arith.truncf %187 : vector<2x8x32xf32> to vector<2x8x32xbf16>
    %189 = vector.extract_strided_slice %182 {offsets = [0, 0, 0], sizes = [2, 8, 16], strides = [1, 1, 1]} : vector<2x8x32xbf16> to vector<2x8x16xbf16>
    %190 = vector.extract_strided_slice %185 {offsets = [0, 0, 0], sizes = [2, 8, 16], strides = [1, 1, 1]} : vector<2x8x32xbf16> to vector<2x8x16xbf16>
    %191 = vector.extract_strided_slice %188 {offsets = [0, 0, 0], sizes = [2, 8, 16], strides = [1, 1, 1]} : vector<2x8x32xbf16> to vector<2x8x16xbf16>
    "tpu.trace_start"() <{level = 10 : i32, message = "bqd,bkd->bqk"}> : () -> ()
    %cst_73 = arith.constant dense<0.000000e+00> : vector<2x8x8xf32>
    %192 = tpu.matmul %189, %190, %cst_73 {dimension_numbers = #tpu.dot_dimension_numbers<[2], [2], [1], [1], [0, 0, 0, 1, 1, 1], [0], [0]>} : vector<2x8x16xbf16>, vector<2x8x16xbf16>, vector<2x8x8xf32> -> vector<2x8x8xf32>
    "tpu.trace_stop"() : () -> ()
    %cst_74 = arith.constant 2.500000e-01 : f32
    %193 = vector.broadcast %cst_74 : f32 to vector<2x8x8xf32>
    %194 = arith.mulf %192, %193 : vector<2x8x8xf32>
    %195 = vector.broadcast %25 : vector<2x1x8xf32> to vector<2x8x8xf32>
    %196 = arith.addf %194, %195 : vector<2x8x8xf32>
    %cst_75 = arith.constant dense<0xFF800000> : vector<2x8xf32>
    %197 = vector.multi_reduction <maximumf>, %196, %cst_75 [2] : vector<2x8x8xf32> to vector<2x8xf32>
    %198 = vector.shape_cast %197 : vector<2x8xf32> to vector<2x8x1xf32>
    %199 = vector.broadcast %198 : vector<2x8x1xf32> to vector<2x8x8xf32>
    %200 = arith.subf %196, %199 : vector<2x8x8xf32>
    %201 = math.exp %200 : vector<2x8x8xf32>
    %cst_76 = arith.constant dense<0.000000e+00> : vector<2x8xf32>
    %202 = vector.multi_reduction <add>, %201, %cst_76 [2] : vector<2x8x8xf32> to vector<2x8xf32>
    %203 = vector.shape_cast %202 : vector<2x8xf32> to vector<2x8x1xf32>
    %204 = tpu.reciprocal %203 {approx = true} : vector<2x8x1xf32> -> vector<2x8x1xf32>
    %205 = vector.broadcast %204 : vector<2x8x1xf32> to vector<2x8x8xf32>
    %206 = arith.mulf %201, %205 : vector<2x8x8xf32>
    %207 = arith.truncf %206 : vector<2x8x8xf32> to vector<2x8x8xbf16>
    "tpu.trace_start"() <{level = 10 : i32, message = "bqk,bkd->bqd"}> : () -> ()
    %cst_77 = arith.constant dense<0.000000e+00> : vector<2x8x16xf32>
    %208 = tpu.matmul %207, %191, %cst_77 {dimension_numbers = #tpu.dot_dimension_numbers<[2], [1], [1], [2], [0, 0, 0, 1, 1, 2], [0], [0]>} : vector<2x8x8xbf16>, vector<2x8x16xbf16>, vector<2x8x16xf32> -> vector<2x8x16xf32>
    "tpu.trace_stop"() : () -> ()
    %209 = vector.extract_strided_slice %182 {offsets = [0, 0, 16], sizes = [2, 8, 16], strides = [1, 1, 1]} : vector<2x8x32xbf16> to vector<2x8x16xbf16>
    %210 = vector.extract_strided_slice %185 {offsets = [0, 0, 16], sizes = [2, 8, 16], strides = [1, 1, 1]} : vector<2x8x32xbf16> to vector<2x8x16xbf16>
    %211 = vector.extract_strided_slice %188 {offsets = [0, 0, 16], sizes = [2, 8, 16], strides = [1, 1, 1]} : vector<2x8x32xbf16> to vector<2x8x16xbf16>
    "tpu.trace_start"() <{level = 10 : i32, message = "bqd,bkd->bqk"}> : () -> ()
    %cst_78 = arith.constant dense<0.000000e+00> : vector<2x8x8xf32>
    %212 = tpu.matmul %209, %210, %cst_78 {dimension_numbers = #tpu.dot_dimension_numbers<[2], [2], [1], [1], [0, 0, 0, 1, 1, 1], [0], [0]>} : vector<2x8x16xbf16>, vector<2x8x16xbf16>, vector<2x8x8xf32> -> vector<2x8x8xf32>
    "tpu.trace_stop"() : () -> ()
    %cst_79 = arith.constant 2.500000e-01 : f32
    %213 = vector.broadcast %cst_79 : f32 to vector<2x8x8xf32>
    %214 = arith.mulf %212, %213 : vector<2x8x8xf32>
    %215 = vector.broadcast %25 : vector<2x1x8xf32> to vector<2x8x8xf32>
    %216 = arith.addf %214, %215 : vector<2x8x8xf32>
    %cst_80 = arith.constant dense<0xFF800000> : vector<2x8xf32>
    %217 = vector.multi_reduction <maximumf>, %216, %cst_80 [2] : vector<2x8x8xf32> to vector<2x8xf32>
    %218 = vector.shape_cast %217 : vector<2x8xf32> to vector<2x8x1xf32>
    %219 = vector.broadcast %218 : vector<2x8x1xf32> to vector<2x8x8xf32>
    %220 = arith.subf %216, %219 : vector<2x8x8xf32>
    %221 = math.exp %220 : vector<2x8x8xf32>
    %cst_81 = arith.constant dense<0.000000e+00> : vector<2x8xf32>
    %222 = vector.multi_reduction <add>, %221, %cst_81 [2] : vector<2x8x8xf32> to vector<2x8xf32>
    %223 = vector.shape_cast %222 : vector<2x8xf32> to vector<2x8x1xf32>
    %224 = tpu.reciprocal %223 {approx = true} : vector<2x8x1xf32> -> vector<2x8x1xf32>
    %225 = vector.broadcast %224 : vector<2x8x1xf32> to vector<2x8x8xf32>
    %226 = arith.mulf %221, %225 : vector<2x8x8xf32>
    %227 = arith.truncf %226 : vector<2x8x8xf32> to vector<2x8x8xbf16>
    "tpu.trace_start"() <{level = 10 : i32, message = "bqk,bkd->bqd"}> : () -> ()
    %cst_82 = arith.constant dense<0.000000e+00> : vector<2x8x16xf32>
    %228 = tpu.matmul %227, %211, %cst_82 {dimension_numbers = #tpu.dot_dimension_numbers<[2], [1], [1], [2], [0, 0, 0, 1, 1, 2], [0], [0]>} : vector<2x8x8xbf16>, vector<2x8x16xbf16>, vector<2x8x16xf32> -> vector<2x8x16xf32>
    "tpu.trace_stop"() : () -> ()
    %229 = tpu.concatenate %208, %228 in 2 : vector<2x8x16xf32>, vector<2x8x16xf32> -> vector<2x8x32xf32>
    %230 = vector.shape_cast %229 : vector<2x8x32xf32> to vector<16x32xf32>
    %231 = arith.truncf %230 : vector<16x32xf32> to vector<16x32xbf16>
    %c1_83 = arith.constant 1 : index
    %c0_84 = arith.constant 0 : index
    %c0_85 = arith.constant 0 : index
    %232 = vector.load %arg5[%c1_83, %c0_84, %c0_85] : memref<2x32x32xbf16, #tpu.memory_space<vmem>>, vector<1x32x32xbf16>
    %233 = vector.shape_cast %232 : vector<1x32x32xbf16> to vector<32x32xbf16>
    %cst_86 = arith.constant dense<0.000000e+00> : vector<16x32xf32>
    %234 = tpu.matmul %231, %233, %cst_86 {dimension_numbers = #tpu.dot_dimension_numbers<[1], [0], [0], [1], [0, 0, 1, 1], [], []>} : vector<16x32xbf16>, vector<32x32xbf16>, vector<16x32xf32> -> vector<16x32xf32>
    %c1_87 = arith.constant 1 : index
    %c0_88 = arith.constant 0 : index
    %c0_89 = arith.constant 0 : index
    %235 = vector.load %arg6[%c1_87, %c0_88, %c0_89] : memref<2x1x32xf32, #tpu.memory_space<vmem>>, vector<1x1x32xf32>
    %236 = vector.shape_cast %235 : vector<1x1x32xf32> to vector<1x32xf32>
    %237 = vector.broadcast %236 : vector<1x32xf32> to vector<16x32xf32>
    %238 = arith.addf %234, %237 : vector<16x32xf32>
    %c1_90 = arith.constant 1 : index
    %c0_91 = arith.constant 0 : index
    %c0_92 = arith.constant 0 : index
    %239 = vector.load %arg7[%c1_90, %c0_91, %c0_92] : memref<2x2x32xf32, #tpu.memory_space<vmem>>, vector<1x2x32xf32>
    %240 = vector.shape_cast %239 : vector<1x2x32xf32> to vector<2x32xf32>
    %241 = arith.addf %238, %171 : vector<16x32xf32>
    %242 = vector.extract_strided_slice %240 {offsets = [0, 0], sizes = [1, 32], strides = [1, 1]} : vector<2x32xf32> to vector<1x32xf32>
    %243 = vector.extract_strided_slice %240 {offsets = [1, 0], sizes = [1, 32], strides = [1, 1]} : vector<2x32xf32> to vector<1x32xf32>
    %cst_93 = arith.constant dense<0.000000e+00> : vector<16xf32>
    %244 = vector.multi_reduction <add>, %241, %cst_93 [1] : vector<16x32xf32> to vector<16xf32>
    %245 = vector.shape_cast %244 : vector<16xf32> to vector<16x1xf32>
    %cst_94 = arith.constant 3.200000e+01 : f32
    %246 = vector.broadcast %cst_94 : f32 to vector<16x1xf32>
    %247 = arith.divf %245, %246 : vector<16x1xf32>
    %248 = vector.broadcast %247 : vector<16x1xf32> to vector<16x32xf32>
    %249 = arith.subf %241, %248 : vector<16x32xf32>
    %250 = arith.mulf %249, %249 : vector<16x32xf32>
    %cst_95 = arith.constant dense<0.000000e+00> : vector<16xf32>
    %251 = vector.multi_reduction <add>, %250, %cst_95 [1] : vector<16x32xf32> to vector<16xf32>
    %252 = vector.shape_cast %251 : vector<16xf32> to vector<16x1xf32>
    %cst_96 = arith.constant 3.200000e+01 : f32
    %253 = vector.broadcast %cst_96 : f32 to vector<16x1xf32>
    %254 = arith.divf %252, %253 : vector<16x1xf32>
    %cst_97 = arith.constant 9.99999996E-13 : f32
    %255 = vector.broadcast %cst_97 : f32 to vector<16x1xf32>
    %256 = arith.addf %254, %255 : vector<16x1xf32>
    %257 = math.rsqrt %256 : vector<16x1xf32>
    %258 = vector.broadcast %257 : vector<16x1xf32> to vector<16x32xf32>
    %259 = arith.mulf %249, %258 : vector<16x32xf32>
    %260 = vector.broadcast %242 : vector<1x32xf32> to vector<16x32xf32>
    %261 = arith.mulf %259, %260 : vector<16x32xf32>
    %262 = vector.broadcast %243 : vector<1x32xf32> to vector<16x32xf32>
    %263 = arith.addf %261, %262 : vector<16x32xf32>
    %264 = arith.truncf %263 : vector<16x32xf32> to vector<16x32xbf16>
    %c1_98 = arith.constant 1 : index
    %c0_99 = arith.constant 0 : index
    %c0_100 = arith.constant 0 : index
    %265 = vector.load %arg8[%c1_98, %c0_99, %c0_100] : memref<2x32x64xbf16, #tpu.memory_space<vmem>>, vector<1x32x64xbf16>
    %266 = vector.shape_cast %265 : vector<1x32x64xbf16> to vector<32x64xbf16>
    %cst_101 = arith.constant dense<0.000000e+00> : vector<16x64xf32>
    %267 = tpu.matmul %264, %266, %cst_101 {dimension_numbers = #tpu.dot_dimension_numbers<[1], [0], [0], [1], [0, 0, 1, 1], [], []>} : vector<16x32xbf16>, vector<32x64xbf16>, vector<16x64xf32> -> vector<16x64xf32>
    %c1_102 = arith.constant 1 : index
    %c0_103 = arith.constant 0 : index
    %c0_104 = arith.constant 0 : index
    %268 = vector.load %arg9[%c1_102, %c0_103, %c0_104] : memref<2x1x64xf32, #tpu.memory_space<vmem>>, vector<1x1x64xf32>
    %269 = vector.shape_cast %268 : vector<1x1x64xf32> to vector<1x64xf32>
    %270 = vector.broadcast %269 : vector<1x64xf32> to vector<16x64xf32>
    %271 = arith.addf %267, %270 : vector<16x64xf32>
    %cst_105 = arith.constant 5.000000e-01 : f32
    %272 = vector.broadcast %cst_105 : f32 to vector<16x64xf32>
    %273 = arith.mulf %272, %271 : vector<16x64xf32>
    %cst_106 = arith.constant 4.471500e-02 : f32
    %274 = vector.broadcast %cst_106 : f32 to vector<16x64xf32>
    %275 = arith.mulf %274, %271 : vector<16x64xf32>
    %276 = arith.mulf %275, %271 : vector<16x64xf32>
    %277 = arith.mulf %276, %271 : vector<16x64xf32>
    %278 = arith.addf %271, %277 : vector<16x64xf32>
    %cst_107 = arith.constant 0.797884583 : f32
    %279 = vector.broadcast %cst_107 : f32 to vector<16x64xf32>
    %280 = arith.mulf %279, %278 : vector<16x64xf32>
    %281 = math.tanh %280 : vector<16x64xf32>
    %cst_108 = arith.constant 1.000000e+00 : f32
    %282 = vector.broadcast %cst_108 : f32 to vector<16x64xf32>
    %283 = arith.addf %282, %281 : vector<16x64xf32>
    %284 = arith.mulf %273, %283 : vector<16x64xf32>
    %285 = arith.truncf %284 : vector<16x64xf32> to vector<16x64xbf16>
    %c1_109 = arith.constant 1 : index
    %c0_110 = arith.constant 0 : index
    %c0_111 = arith.constant 0 : index
    %286 = vector.load %arg10[%c1_109, %c0_110, %c0_111] : memref<2x64x32xbf16, #tpu.memory_space<vmem>>, vector<1x64x32xbf16>
    %287 = vector.shape_cast %286 : vector<1x64x32xbf16> to vector<64x32xbf16>
    %cst_112 = arith.constant dense<0.000000e+00> : vector<16x32xf32>
    %288 = tpu.matmul %285, %287, %cst_112 {dimension_numbers = #tpu.dot_dimension_numbers<[1], [0], [0], [1], [0, 0, 1, 1], [], []>} : vector<16x64xbf16>, vector<64x32xbf16>, vector<16x32xf32> -> vector<16x32xf32>
    %c1_113 = arith.constant 1 : index
    %c0_114 = arith.constant 0 : index
    %c0_115 = arith.constant 0 : index
    %289 = vector.load %arg11[%c1_113, %c0_114, %c0_115] : memref<2x1x32xf32, #tpu.memory_space<vmem>>, vector<1x1x32xf32>
    %290 = vector.shape_cast %289 : vector<1x1x32xf32> to vector<1x32xf32>
    %291 = vector.broadcast %290 : vector<1x32xf32> to vector<16x32xf32>
    %292 = arith.addf %288, %291 : vector<16x32xf32>
    %c1_116 = arith.constant 1 : index
    %c0_117 = arith.constant 0 : index
    %c0_118 = arith.constant 0 : index
    %293 = vector.load %arg12[%c1_116, %c0_117, %c0_118] : memref<2x2x32xf32, #tpu.memory_space<vmem>>, vector<1x2x32xf32>
    %294 = vector.shape_cast %293 : vector<1x2x32xf32> to vector<2x32xf32>
    %295 = arith.addf %292, %263 : vector<16x32xf32>
    %296 = vector.extract_strided_slice %294 {offsets = [0, 0], sizes = [1, 32], strides = [1, 1]} : vector<2x32xf32> to vector<1x32xf32>
    %297 = vector.extract_strided_slice %294 {offsets = [1, 0], sizes = [1, 32], strides = [1, 1]} : vector<2x32xf32> to vector<1x32xf32>
    %cst_119 = arith.constant dense<0.000000e+00> : vector<16xf32>
    %298 = vector.multi_reduction <add>, %295, %cst_119 [1] : vector<16x32xf32> to vector<16xf32>
    %299 = vector.shape_cast %298 : vector<16xf32> to vector<16x1xf32>
    %cst_120 = arith.constant 3.200000e+01 : f32
    %300 = vector.broadcast %cst_120 : f32 to vector<16x1xf32>
    %301 = arith.divf %299, %300 : vector<16x1xf32>
    %302 = vector.broadcast %301 : vector<16x1xf32> to vector<16x32xf32>
    %303 = arith.subf %295, %302 : vector<16x32xf32>
    %304 = arith.mulf %303, %303 : vector<16x32xf32>
    %cst_121 = arith.constant dense<0.000000e+00> : vector<16xf32>
    %305 = vector.multi_reduction <add>, %304, %cst_121 [1] : vector<16x32xf32> to vector<16xf32>
    %306 = vector.shape_cast %305 : vector<16xf32> to vector<16x1xf32>
    %cst_122 = arith.constant 3.200000e+01 : f32
    %307 = vector.broadcast %cst_122 : f32 to vector<16x1xf32>
    %308 = arith.divf %306, %307 : vector<16x1xf32>
    %cst_123 = arith.constant 9.99999996E-13 : f32
    %309 = vector.broadcast %cst_123 : f32 to vector<16x1xf32>
    %310 = arith.addf %308, %309 : vector<16x1xf32>
    %311 = math.rsqrt %310 : vector<16x1xf32>
    %312 = vector.broadcast %311 : vector<16x1xf32> to vector<16x32xf32>
    %313 = arith.mulf %303, %312 : vector<16x32xf32>
    %314 = vector.broadcast %296 : vector<1x32xf32> to vector<16x32xf32>
    %315 = arith.mulf %313, %314 : vector<16x32xf32>
    %316 = vector.broadcast %297 : vector<1x32xf32> to vector<16x32xf32>
    %317 = arith.addf %315, %316 : vector<16x32xf32>
    %318 = vector.shape_cast %317 : vector<16x32xf32> to vector<2x8x32xf32>
    %319 = vector.extract_strided_slice %318 {offsets = [0, 0, 0], sizes = [2, 1, 32], strides = [1, 1, 1]} : vector<2x8x32xf32> to vector<2x1x32xf32>
    %320 = vector.shape_cast %319 : vector<2x1x32xf32> to vector<2x32xf32>
    %321 = arith.truncf %320 : vector<2x32xf32> to vector<2x32xbf16>
    %c0_124 = arith.constant 0 : index
    %c0_125 = arith.constant 0 : index
    %322 = vector.load %arg13[%c0_124, %c0_125] : memref<32x32xbf16, #tpu.memory_space<vmem>>, vector<32x32xbf16>
    %cst_126 = arith.constant dense<0.000000e+00> : vector<2x32xf32>
    %323 = tpu.matmul %321, %322, %cst_126 {dimension_numbers = #tpu.dot_dimension_numbers<[1], [0], [0], [1], [0, 0, 1, 1], [], []>} : vector<2x32xbf16>, vector<32x32xbf16>, vector<2x32xf32> -> vector<2x32xf32>
    %c0_127 = arith.constant 0 : index
    %c0_128 = arith.constant 0 : index
    %324 = vector.load %arg14[%c0_127, %c0_128] : memref<1x32xf32, #tpu.memory_space<vmem>>, vector<1x32xf32>
    %325 = vector.broadcast %324 : vector<1x32xf32> to vector<2x32xf32>
    %326 = arith.addf %323, %325 : vector<2x32xf32>
    %327 = math.tanh %326 : vector<2x32xf32>
    %c0_129 = arith.constant 0 : index
    %c0_130 = arith.constant 0 : index
    %328 = vector.load %arg15[%c0_129, %c0_130] : memref<2x32xf32, #tpu.memory_space<vmem>>, vector<2x32xf32>
    %329 = arith.mulf %327, %328 : vector<2x32xf32>
    %330 = arith.truncf %329 : vector<2x32xf32> to vector<2x32xbf16>
    %c0_131 = arith.constant 0 : index
    %c0_132 = arith.constant 0 : index
    %331 = vector.load %arg16[%c0_131, %c0_132] : memref<32x2xbf16, #tpu.memory_space<vmem>>, vector<32x2xbf16>
    %cst_133 = arith.constant dense<0.000000e+00> : vector<2x2xf32>
    %332 = tpu.matmul %330, %331, %cst_133 {dimension_numbers = #tpu.dot_dimension_numbers<[1], [0], [0], [1], [0, 0, 1, 1], [], []>} : vector<2x32xbf16>, vector<32x2xbf16>, vector<2x2xf32> -> vector<2x2xf32>
    %c0_134 = arith.constant 0 : index
    %c0_135 = arith.constant 0 : index
    %333 = vector.load %arg17[%c0_134, %c0_135] : memref<1x2xf32, #tpu.memory_space<vmem>>, vector<1x2xf32>
    %334 = vector.broadcast %333 : vector<1x2xf32> to vector<2x2xf32>
    %335 = arith.addf %332, %334 : vector<2x2xf32>
    %c0_136 = arith.constant 0 : index
    %c0_137 = arith.constant 0 : index
    %336 = vector.load %arg18[%c0_136, %c0_137] : memref<2x2xf32, #tpu.memory_space<vmem>>, vector<2x2xf32>
    tpu.vector_store %arg18[%c0_136, %c0_137], %335 {strides = array<i32>} : memref<2x2xf32, #tpu.memory_space<vmem>>, vector<2x2xf32>,
    return
  }
}

</mosaic_0001>

<bundles_post_ra>
// kernel: is_similar_classifier_forward.1
= control target key start
LH: loop header
LB: loop body
LE: loop exit
PB: predicated region body
PF: predicated region fallthrough
CT: control target
= control target key end

     0   :  { %s3003_s0 = inlined_call_operand.vmem [shape: f32[16,32], index: 0, kind: input, shape index: {}]   ;;  %s3004_s1 = inlined_call_operand.vmem [shape: f32[2,8], index: 1, kind: input, shape index: {}]   ;;  %s3005_s2 = inlined_call_operand.vmem [shape: f32[2,32], index: 2, kind: input, shape index: {}]   ;;  %s3006_s3 = inlined_call_operand.vmem [shape: bf16[2,32,96], index: 3, kind: input, shape index: {}]   ;;  %s3007_s4 = inlined_call_operand.vmem [shape: f32[2,1,96], index: 4, kind: input, shape index: {}]   ;;  %s3008_s5 = inlined_call_operand.vmem [shape: bf16[2,32,32], index: 5, kind: input, shape index: {}]   ;;  %s3009_s6 = inlined_call_operand.vmem [shape: f32[2,1,32], index: 6, kind: input, shape index: {}]   ;;  %s3010_s7 = inlined_call_operand.vmem [shape: f32[2,2,32], index: 7, kind: input, shape index: {}]   ;;  %s3011_s8 = inlined_call_operand.vmem [shape: bf16[2,32,64], index: 8, kind: input, shape index: {}]   ;;  %s3012_s9 = inlined_call_operand.vmem [shape: f32[2,1,64], index: 9, kind: input, shape index: {}]   ;;  %s3013_s10 = inlined_call_operand.vmem [shape: bf16[2,64,32], index: 10, kind: input, shape index: {}]   ;;  %s3014_s11 = inlined_call_operand.vmem [shape: f32[2,1,32], index: 11, kind: input, shape index: {}]   ;;  %s3015_s12 = inlined_call_operand.vmem [shape: f32[2,2,32], index: 12, kind: input, shape index: {}]   ;;  %s3016_s13 = inlined_call_operand.vmem [shape: bf16[32,32], index: 13, kind: input, shape index: {}]   ;;  %s3017_s14 = inlined_call_operand.vmem [shape: f32[1,32], index: 14, kind: input, shape index: {}]   ;;  %s3018_s15 = inlined_call_operand.vmem [shape: f32[2,32], index: 15, kind: input, shape index: {}]   ;;  %s3019_s16 = inlined_call_operand.vmem [shape: bf16[32,2], index: 16, kind: input, shape index: {}]   ;;  %s3020_s17 = inlined_call_operand.vmem [shape: f32[1,2], index: 17, kind: input, shape index: {}]   ;;  %s3021_s18 = inlined_call_operand.hbm [shape: f32[2,2], index: 18, kind: output, shape index: {}]  }
   0x1   :  { %3023 = sst [smem:[#allocation5_spill]] %s3003_s0 }
   0x2   :  { %3024 = sst [smem:[#allocation6_spill]] %s3004_s1 }
   0x3   :  { %3025 = sst [smem:[#allocation7_spill]] %s3005_s2 }
   0x4   :  { %s3026_s29 = sld [smem:[#allocation5_spill]]  ;;  %vm64_vm0 = vcmask 261120  }
   0xa   :  { %v61_v0 = vld [vmem:[%s3026_s29] sm:$0xff]  ;;  %v62_v1 = vld [vmem:[%s3026_s29 + $0x8] sm:$0xff] }
   0xb   :  { %v65_v2 = vsel %vm64_vm0, %v61_v0, 0.0  ;;  %v68_v3 = vsel %vm64_vm0, %v62_v1, 0.0 }
   0xc   :  { %66 = vadd.xlane.f32.xlu0 %v65_v2 }
  0x10   :  { %69 = vadd.xlane.f32.xlu0 %v68_v3 }
  0x11   :  { %23 = vsyncpa [#allocation3], 0  ;;  %v2363_v14 = vld [vmem:[%s3006_s3] sm:$0xff]   ;;  %v2473_v15 = vmov 0.0   ;;  %v2364_v16 = vld [vmem:[%s3006_s3 + $0x8] sm:$0xff]   ;;  %vm2474_vm1 = vmmov 0   ;;  %v92_v21 = vlaneseq }
  0x12   :  { %2159 = vmatprep.subr.bf16.mxu0 %v2473_v15  ;;  %2167 = vmatprep.subr.bf16.mxu1 %v2473_v15  ;;  %s3027_s23 = sld [smem:[#allocation7_spill]]  ;;  %v2007_v39 = vld [vmem:[%s3007_s4] ss:$0 sm:$0xff]  ;;  %s2475_s26 = smov 96   ;;  %vm201_vm2 = vcmask 130048   ;;  %vm311_vm3 = vcmask 64512  }
  0x13   :  { %2160 = vmatpush3.bf16.msra.mxu0 %v2363_v14  ;;  %2163 = vmatprep.mubr.msk.bf16.mxu0 %vm2474_vm1, %v2473_v15  ;;  %v93_v24 = vshrl.u32 %v92_v21, 7  ;;  %v2476_v52 = vmov 1966171168   ;;  %s3028_s29 = sld [smem:[#allocation6_spill]]  ;;  %s2477_s30 = smov 64   ;;  %vm341_vm4 = vcmask 1043456  }
  0x14   :  { %2161 = vmatprep.subr.bf16.mxu0 %v2473_v15  ;;  %2169 = vmatprep.mubr.msk.bf16.mxu1 %vm2474_vm1, %v2473_v15  ;;  %v115_v53 = vunpack.c.l.s4 %v2476_v52  ;;  %s2478_s0 = smov 80   ;;  %s2479_s19 = smov 112   ;;  %vm902_vm5 = vcmask 523264   ;;  %vm1862_vm6 = vcmask 1041409   ;;  %vm1990_vm7 = vcmask 9216  }
  0x15   :  { %v2602_v25 = vsub.s32 0, %v93_v24  ;;  %v2608_v30 = vsub.s32 1, %v93_v24  ;;  %s2480_s1 = smov 48  }
  0x16   :  { %v116_v54 = vunpack.c.0.s8 %v115_v53 }
  0x17   :  { %2162 = vmatpush3.bf16.msra.mxu0 %v2364_v16 }
  0x18   :  { %2173 = vmatprep.subr.bf16.mxu0 %v2473_v15  ;;  %v63_v26 = vld [vmem:[%s3027_s23] sm:$0x3]  ;;  %v119_v56 = vsub.s32 %v116_v54, %v93_v24  ;;  %s2481_s23 = smov 16  }
  0x19   :  { %v95_v29 = vrot.slane %v63_v26, %v2602_v25  ;;  %v101_v34 = vrot.slane %v63_v26, %v2608_v30  ;;  %v2006_v55 = vld.sshfl [vmem:[%s3028_s29] sm:$0x11 pattern:$0x75316420] }
  0x1a   :  { %v113_v57 = vcombine.high %v2006_v55, %v2006_v55  ;;  %v120_v58 = vrot.slane %v2006_v55, %v119_v56 }
  0x1c   :  { %v127_v59 = vrot.slane %v113_v57, %v119_v56  ;;  %v2647_v60 = vrot.slane %v120_v58, %v2602_v25 }
  0x99   :  { %v67_v4 = vpop.xlane.xlu0 %66 }
  0x9a   :  { %v72_v5 = vmul.f32 0.03125, %v67_v4 }
  0x9c   :  { %v74_v6 = vsub.f32 %v61_v0, %v72_v5  ;;  %v2650_v0 = vrot.slane %v127_v59, %v2602_v25 }
  0x9d   :  { %v70_v7 = vpop.xlane.xlu0 %69 }
  0x9e   :  { %v73_v8 = vmul.f32 0.03125, %v70_v7  ;;  %v76_v9 = vmul.f32 %v74_v6, %v74_v6 }
  0xa0   :  { %v75_v10 = vsub.f32 %v62_v1, %v73_v8  ;;  %v78_v11 = vsel %vm64_vm0, %v76_v9, 0.0 }
  0xa1   :  { %79 = vadd.xlane.f32.xlu1 %v78_v11 }
  0xa2   :  { %v77_v12 = vmul.f32 %v75_v10, %v75_v10 }
  0xa4   :  { %v81_v13 = vsel %vm64_vm0, %v77_v12, 0.0 }
  0xa5   :  { %82 = vadd.xlane.f32.xlu1 %v81_v13 }
 0x12e   :  { %v80_v17 = vpop.xlane.xlu1 %79 }
 0x12f   :  { %v84_v18 = vmul.f32 0.03125, %v80_v17 }
 0x131   :  { %v86_v19 = vadd.f32 1e-12, %v84_v18 }
 0x132   :  { %v83_v20 = vpop.xlane.xlu1 %82 }
 0x133   :  { %2387 = vrsqrt.f32 %v86_v19  ;;  %v85_v22 = vmul.f32 0.03125, %v83_v20 }
 0x135   :  { %v87_v23 = vadd.f32 1e-12, %v85_v22 }
 0x137   :  { %2389 = vrsqrt.f32 %v87_v23 }
 0x13d   :  { %v2388_v27 = vpop.eup %2387 }
 0x13e   :  { %v90_v28 = vmul.f32 %v2388_v27, %v74_v6 }
 0x140   :  { %v96_v33 = vmul.f32 %v95_v29, %v90_v28 }
 0x141   :  { %v2390_v31 = vpop.eup %2389 }
 0x142   :  { %v91_v32 = vmul.f32 %v2390_v31, %v75_v10  ;;  %v2611_v36 = vadd.f32 %v101_v34, %v96_v33 }
 0x144   :  { %v97_v35 = vmul.f32 %v95_v29, %v91_v32 }
 0x146   :  { %v2613_v37 = vadd.f32 %v101_v34, %v97_v35 }
 0x148   :  { %v128_v38 = vpack.c.bf16 %v2613_v37, %v2611_v36 }
 0x14a   :  { %2164 = vmatmul.mubr.msk.bf16.vlgmr.msra.gmra.mrb[0].mxu0 %vm64_vm0, %v128_v38 }
 0x14b   :  { %2175 = vmatprep.mubr.msk.bf16.mxu0 %vm2474_vm1, %v2473_v15 }
 0x21d   :  { %v189_v40 = vpop.f32.mrb[0].mxu0 }
 0x21e   :  { %v190_v41 = vadd.f32 %v2007_v39, %v189_v40  ;;  %v2165_v42 = vpop.f32.mrb[1].mxu0 }
 0x21f   :  { %v192_v43 = vpop.f32.mrb[2].mxu0 }
 0x220   :  { %v2623_v44 = vpack.c.bf16 %v190_v41, %v190_v41  ;;  %v193_v45 = vadd.f32 %v2007_v39, %v192_v43  ;;  %v2166_v46 = vpop.f32.mrb[3].mxu0 }
 0x222   :  { %v2625_v47 = vpack.c.bf16 %v193_v45, %v193_v45  ;;  %199 = vrot.lane.b32.xlu0 %v2623_v44, %s2475_s26 }
 0x224   :  { %249 = vrot.lane.b32.xlu1 %v2625_v47, %s2475_s26 }
 0x294   :  { %v200_v48 = vpop.permute.xlu0 %199 }
 0x295   :  { %v206_v49 = vsel %vm201_vm2, %v200_v48, 0 }
 0x296   :  { %2168 = vmatpush3.bf16.xpose.msra.mxu1 %v206_v49  ;;  %v250_v50 = vpop.permute.xlu1 %249 }
 0x297   :  { %v255_v51 = vsel %vm201_vm2, %v250_v50, 0  ;;  %2179 = vmatprep.subr.bf16.mxu1 %v2473_v15 }
 0x298   :  { %2174 = vmatpush3.bf16.xpose.msra.mxu0 %v255_v51 }
 0x299   :  { %2185 = vmatprep.subr.bf16.mxu0 %v2473_v15 }
 0x29d   :  { %2170 = vmatmul.mubr.msk.bf16.vlgmr.msra.gmra.mrb[0].mxu1 %vm201_vm2, %v2623_v44 }
 0x29e   :  { %2181 = vmatprep.mubr.msk.bf16.mxu1 %vm2474_vm1, %v2473_v15 }
 0x29f   :  { %2176 = vmatmul.mubr.msk.bf16.vlgmr.msra.gmra.mrb[4].mxu0 %vm201_vm2, %v2625_v47 }
 0x2a0   :  { %2187 = vmatprep.mubr.msk.bf16.mxu0 %vm2474_vm1, %v2473_v15 }
 0x370   :  { %v242_v61 = vpop.f32.mrb[0].mxu1 }
 0x371   :  { %v297_v62 = vmul.f32 0.25, %v242_v61  ;;  %v2171_v63 = vpop.f32.mrb[1].mxu1 }
 0x372   :  { %v245_v1 = vpop.f32.mrb[2].mxu1  ;;  %v291_v2 = vpop.f32.mrb[4].mxu0 }
 0x373   :  { %v298_v3 = vmul.f32 0.25, %v291_v2  ;;  %v2172_v4 = vpop.f32.mrb[3].mxu1  ;;  %v2177_v5 = vpop.f32.mrb[5].mxu0  ;;  %v309_v6 = vadd.f32 %v2647_v60, %v297_v62 }
 0x374   :  { %v294_v7 = vpop.f32.mrb[6].mxu0 }
 0x375   :  { %v2178_v8 = vpop.f32.mrb[7].mxu0  ;;  %v312_v9 = vsel %vm311_vm3, %v309_v6, -inf  ;;  %v310_v10 = vadd.f32 %v2650_v0, %v298_v3 }
 0x376   :  { %313 = vmax.xlane.f32.xlu1 %v312_v9 }
 0x377   :  { %v315_v11 = vsel %vm311_vm3, %v310_v10, -inf }
 0x378   :  { %316 = vmax.xlane.f32.xlu0 %v315_v11 }
 0x387   :  { %385 = vrot.lane.b32.xlu1 %v2625_v47, %s2477_s30 }
 0x38b   :  { %435 = vrot.lane.b32.xlu1 %v2623_v44, %s2478_s0 }
 0x403   :  { %v314_v12 = vpop.xlane.xlu1 %313 }
 0x404   :  { %v318_v13 = vsub.f32 %v309_v6, %v314_v12 }
 0x405   :  { %v317_v14 = vpop.xlane.xlu0 %316 }
 0x406   :  { %v320_v16 = vmul.f32 1.442695, %v318_v13  ;;  %v319_v17 = vsub.f32 %v310_v10, %v317_v14 }
 0x407   :  { %v386_v18 = vpop.permute.xlu1 %385 }
 0x408   :  { %2391 = vpow2.f32 %v320_v16  ;;  %v322_v19 = vmul.f32 1.442695, %v319_v17  ;;  %v391_v20 = vsel %vm341_vm4, %v386_v18, 0 }
 0x409   :  { %2186 = vmatpush3.bf16.msra.mxu0 %v391_v20 }
 0x40a   :  { %2393 = vpow2.f32 %v322_v19  ;;  %2197 = vmatprep.subr.bf16.mxu0 %v2473_v15 }
 0x40b   :  { %v436_v26 = vpop.permute.xlu1 %435 }
 0x40c   :  { %v441_v40 = vsel %vm201_vm2, %v436_v26, 0 }
 0x412   :  { %v2392_v21 = vpop.eup %2391 }
 0x413   :  { %v324_v22 = vsel %vm311_vm3, %v2392_v21, 0.0 }
 0x414   :  { %v2394_v23 = vpop.eup %2393  ;;  %325 = vadd.xlane.f32.xlu0 %v324_v22 }
 0x415   :  { %v327_v24 = vsel %vm311_vm3, %v2394_v23, 0.0 }
 0x416   :  { %328 = vadd.xlane.f32.xlu1 %v327_v24 }
 0x427   :  { %485 = vrot.lane.b32.xlu1 %v2625_v47, %s2478_s0 }
 0x42a   :  { %336 = vrot.lane.b32.xlu0 %v2623_v44, %s2477_s30 }
 0x42b   :  { %483 = vrot.lane.b32.xlu1 %v2625_v47, %s2479_s19 }
 0x42e   :  { %433 = vrot.lane.b32.xlu0 %v2623_v44, %s2479_s19 }
 0x4a1   :  { %v326_v27 = vpop.xlane.xlu0 %325 }
 0x4a2   :  { %2395 = vrcp.f32 %v326_v27 }
 0x4a3   :  { %v329_v28 = vpop.xlane.xlu1 %328 }
 0x4a4   :  { %2397 = vrcp.f32 %v329_v28 }
 0x4a5   :  { %v337_v29 = vpop.permute.xlu0 %336 }
 0x4a6   :  { %v343_v31 = vsel %vm341_vm4, %v337_v29, 0  ;;  %v2365_v29 = vld [vmem:[%s3008_s5] sm:$0xff]  }
 0x4a7   :  { %2180 = vmatpush3.bf16.msra.mxu1 %v343_v31  ;;  %v486_v39 = vpop.permute.xlu1 %485  ;;  %v2366_v31 = vld [vmem:[%s3008_s5 + $0x8] sm:$0xff]  }
 0x4a8   :  { %2191 = vmatprep.subr.bf16.mxu1 %v2473_v15  ;;  %v491_v42 = vsel %vm201_vm2, %v486_v39, 0 }
 0x4a9   :  { %v434_v43 = vpop.permute.xlu0 %433 }
 0x4ab   :  { %v484_v45 = vpop.permute.xlu1 %483 }
 0x4ac   :  { %v2396_v32 = vpop.eup %2395 }
 0x4ad   :  { %v332_v33 = vmul.f32 %v2396_v32, %v2392_v21 }
 0x4ae   :  { %v2398_v34 = vpop.eup %2397 }
 0x4af   :  { %v333_v35 = vmul.f32 %v2398_v34, %v2394_v23  ;;  %v334_v38 = vpack.c.bf16 %v332_v33, %v332_v33 }
 0x4b1   :  { %2182 = vmatmul.mubr.msk.bf16.vlgmr.msra.gmra.mrb[4].mxu1 %vm311_vm3, %v334_v38  ;;  %v335_v41 = vpack.c.bf16 %v333_v35, %v333_v35 }
 0x4b2   :  { %2192 = vmatpush3.bf16.xpose.msra.mxu1 %v441_v40  ;;  %2193 = vmatprep.mubr.msk.bf16.mxu1 %vm2474_vm1, %v2473_v15 }
 0x4b3   :  { %2188 = vmatmul.mubr.msk.bf16.vlgmr.msra.gmra.mrb[8].mxu0 %vm311_vm3, %v335_v41  ;;  %2203 = vmatprep.subr.bf16.mxu1 %v2473_v15 }
 0x4b4   :  { %2198 = vmatpush3.bf16.xpose.msra.mxu0 %v491_v42  ;;  %2199 = vmatprep.mubr.msk.bf16.mxu0 %vm2474_vm1, %v2473_v15 }
 0x4b5   :  { %2209 = vmatprep.subr.bf16.mxu0 %v2473_v15 }
 0x4b9   :  { %2194 = vmatmul.mubr.msk.bf16.vlgmr.msra.gmra.mrb[8].mxu1 %vm201_vm2, %v434_v43 }
 0x4ba   :  { %2205 = vmatprep.mubr.msk.bf16.mxu1 %vm2474_vm1, %v2473_v15 }
 0x4bb   :  { %2200 = vmatmul.mubr.msk.bf16.vlgmr.msra.gmra.mrb[12].mxu0 %vm201_vm2, %v484_v45 }
 0x4bc   :  { %2211 = vmatprep.mubr.msk.bf16.mxu0 %vm2474_vm1, %v2473_v15 }
 0x584   :  { %v2690_v46 = vpop.f32.mrb[4].mxu1 }
 0x585   :  { %v2183_v48 = vpop.f32.mrb[5].mxu1 }
 0x586   :  { %v382_v49 = vpop.f32.mrb[6].mxu1  ;;  %v2692_v50 = vpop.f32.mrb[8].mxu0 }
 0x587   :  { %v2184_v51 = vpop.f32.mrb[7].mxu1  ;;  %v2189_v52 = vpop.f32.mrb[9].mxu0 }
 0x588   :  { %v430_v53 = vpop.f32.mrb[10].mxu0 }
 0x589   :  { %v2190_v54 = vpop.f32.mrb[11].mxu0  ;;  %v2019_v53 = vld [vmem:[%s3009_s6] ss:$0 sm:$0xff] }
 0x58c   :  { %v477_v55 = vpop.f32.mrb[8].mxu1 }
 0x58d   :  { %v533_v56 = vmul.f32 0.25, %v477_v55  ;;  %v2195_v57 = vpop.f32.mrb[9].mxu1 }
 0x58e   :  { %v480_v58 = vpop.f32.mrb[10].mxu1  ;;  %v527_v59 = vpop.f32.mrb[12].mxu0 }
 0x58f   :  { %v534_v61 = vmul.f32 0.25, %v527_v59  ;;  %v2196_v62 = vpop.f32.mrb[11].mxu1  ;;  %v2201_v63 = vpop.f32.mrb[13].mxu0  ;;  %v535_v1 = vadd.f32 %v533_v56, %v2647_v60 }
 0x590   :  { %v530_v2 = vpop.f32.mrb[14].mxu0 }
 0x591   :  { %v2202_v3 = vpop.f32.mrb[15].mxu0  ;;  %v537_v4 = vsel %vm311_vm3, %v535_v1, -inf  ;;  %v536_v5 = vadd.f32 %v534_v61, %v2650_v0 }
 0x592   :  { %538 = vmax.xlane.f32.xlu0 %v537_v4 }
 0x593   :  { %v540_v6 = vsel %vm311_vm3, %v536_v5, -inf }
 0x594   :  { %541 = vmax.xlane.f32.xlu1 %v540_v6 }
 0x5a5   :  { %609 = vrot.lane.b32.xlu1 %v2625_v47, %s2480_s1 }
 0x61f   :  { %v539_v7 = vpop.xlane.xlu0 %538 }
 0x620   :  { %v543_v8 = vsub.f32 %v535_v1, %v539_v7 }
 0x621   :  { %v542_v9 = vpop.xlane.xlu1 %541 }
 0x622   :  { %v545_v10 = vmul.f32 1.442695, %v543_v8  ;;  %v544_v11 = vsub.f32 %v536_v5, %v542_v9  ;;  %v2368_v9 = vld [vmem:[%s3011_s8 + $0x8] sm:$0xff]  }
 0x624   :  { %2399 = vpow2.f32 %v545_v10  ;;  %v547_v12 = vmul.f32 1.442695, %v544_v11 }
 0x625   :  { %v610_v13 = vpop.permute.xlu1 %609 }
 0x626   :  { %2401 = vpow2.f32 %v547_v12  ;;  %v615_v14 = vsel %vm341_vm4, %v610_v13, 0 }
 0x627   :  { %2210 = vmatpush3.bf16.msra.mxu0 %v615_v14 }
 0x628   :  { %2223 = vmatprep.subr.bf16.mxu0 %v2473_v15 }
 0x62e   :  { %v2400_v16 = vpop.eup %2399 }
 0x62f   :  { %v549_v17 = vsel %vm311_vm3, %v2400_v16, 0.0 }
 0x630   :  { %v2402_v18 = vpop.eup %2401  ;;  %550 = vadd.xlane.f32.xlu0 %v549_v17  ;;  %v735_v17 = vld [vmem:[%s3010_s7] sm:$0x3] }
 0x631   :  { %v552_v47 = vsel %vm311_vm3, %v2402_v18, 0.0 }
 0x634   :  { %553 = vadd.xlane.f32.xlu0 %v552_v47  ;;  %v767_v47 = vrot.slane %v735_v17, %v2602_v25 }
 0x64a   :  { %561 = vrot.lane.b32.xlu0 %v2623_v44, %s2480_s1 }
 0x6bd   :  { %v551_v19 = vpop.xlane.xlu0 %550 }
 0x6be   :  { %2403 = vrcp.f32 %v551_v19 }
 0x6c1   :  { %v554_v20 = vpop.xlane.xlu0 %553 }
 0x6c2   :  { %2405 = vrcp.f32 %v554_v20 }
 0x6c5   :  { %v562_v21 = vpop.permute.xlu0 %561 }
 0x6c6   :  { %v567_v22 = vsel %vm341_vm4, %v562_v21, 0 }
 0x6c7   :  { %2204 = vmatpush3.bf16.msra.mxu1 %v567_v22 }
 0x6c8   :  { %v2404_v23 = vpop.eup %2403  ;;  %2215 = vmatprep.subr.bf16.mxu1 %v2473_v15 }
 0x6c9   :  { %v557_v24 = vmul.f32 %v2404_v23, %v2400_v16  ;;  %v773_v23 = vrot.slane %v735_v17, %v2608_v30 }
 0x6cb   :  { %v559_v26 = vpack.c.bf16 %v557_v24, %v557_v24 }
 0x6cc   :  { %v2406_v27 = vpop.eup %2405 }
 0x6cd   :  { %v558_v28 = vmul.f32 %v2406_v27, %v2402_v18  ;;  %2206 = vmatmul.mubr.msk.bf16.vlgmr.msra.gmra.mrb[12].mxu1 %vm311_vm3, %v559_v26 }
 0x6ce   :  { %2219 = vmatprep.mubr.msk.bf16.mxu1 %vm2474_vm1, %v2473_v15  ;;  %2216 = vmatpush3.bf16.msra.mxu1 %v2365_v29  ;;  %v2370_v29 = vld [vmem:[%s3013_s10 + $0x8] sm:$0xff]  }
 0x6cf   :  { %v560_v44 = vpack.c.bf16 %v558_v28, %v558_v28  ;;  %2217 = vmatprep.subr.bf16.mxu1 %v2473_v15 }
 0x6d1   :  { %2212 = vmatmul.mubr.msk.bf16.vlgmr.msra.gmra.mrb[16].mxu0 %vm311_vm3, %v560_v44  ;;  %v2369_v44 = vld [vmem:[%s3013_s10] sm:$0xff]  }
 0x6d2   :  { %2227 = vmatprep.mubr.msk.bf16.mxu0 %vm2474_vm1, %v2473_v15  ;;  %2218 = vmatpush3.bf16.msra.mxu1 %v2366_v31  ;;  %v2371_v31 = vld [vmem:[%s3013_s10 + $0x10] sm:$0xff]  }
 0x6d3   :  { %2231 = vmatprep.subr.bf16.mxu1 %v2473_v15 }
 0x7a0   :  { %v603_v32 = vpop.f32.mrb[12].mxu1 }
 0x7a1   :  { %v2207_v33 = vpop.f32.mrb[13].mxu1 }
 0x7a2   :  { %v606_v34 = vpop.f32.mrb[14].mxu1  ;;  %v2023_v33 = vld [vmem:[%s3012_s9] ss:$0 sm:$0xff] }
 0x7a3   :  { %v2208_v35 = vpop.f32.mrb[15].mxu1 }
 0x7a4   :  { %v651_v38 = vpop.f32.mrb[16].mxu0 }
 0x7a5   :  { %v2353_v39 = vpack.i.bf16 %v651_v38, %v603_v32  ;;  %v2213_v40 = vpop.f32.mrb[17].mxu0  ;;  %v2372_v32 = vld [vmem:[%s3013_s10 + $0x18] sm:$0xff]  }
 0x7a6   :  { %v654_v41 = vpop.f32.mrb[18].mxu0 }
 0x7a7   :  { %2354 = vrot.lane.b32.xlu1 %v2353_v39, %s2481_s23  ;;  %v2214_v42 = vpop.f32.mrb[19].mxu0 }
 0x819   :  { %v2355_v43 = vpop.permute.xlu1 %2354 }
 0x81a   :  { %v2357_v45 = vunpack.i.h.bf16 %v2355_v43  ;;  %v2356_v48 = vunpack.i.l.bf16 %v2355_v43 }
 0x81c   :  { %v666_v49 = vsel %vm201_vm2, %v2692_v50, %v2357_v45  ;;  %v665_v51 = vsel %vm201_vm2, %v2690_v46, %v2356_v48 }
 0x81d   :  { %v667_v52 = vpack.c.bf16 %v666_v49, %v665_v51 }
 0x81f   :  { %2220 = vmatmul.mubr.msk.bf16.vlgmr.msra.gmra.mrb[16].mxu1 %vm64_vm0, %v667_v52 }
 0x820   :  { %2239 = vmatprep.mubr.msk.bf16.mxu1 %vm2474_vm1, %v2473_v15  ;;  %2232 = vmatpush3.bf16.msra.mxu1 %v2369_v44  ;;  %v947_v44 = vld [vmem:[%s3015_s12] sm:$0x3] }
 0x821   :  { %2233 = vmatprep.subr.bf16.mxu1 %v2473_v15 }
 0x824   :  { %2234 = vmatpush3.bf16.msra.mxu1 %v2370_v29  ;;  %v979_v29 = vrot.slane %v947_v44, %v2602_v25 }
 0x825   :  { %2235 = vmatprep.subr.bf16.mxu1 %v2473_v15 }
 0x828   :  { %2236 = vmatpush3.bf16.msra.mxu1 %v2371_v31 }
 0x829   :  { %2237 = vmatprep.subr.bf16.mxu1 %v2473_v15 }
 0x82c   :  { %2238 = vmatpush3.bf16.msra.mxu1 %v2372_v32 }
 0x82d   :  { %2257 = vmatprep.subr.bf16.mxu1 %v2473_v15 }
 0x8f2   :  { %v728_v54 = vpop.f32.mrb[16].mxu1 }
 0x8f3   :  { %v729_v55 = vadd.f32 %v2019_v53, %v728_v54  ;;  %v2221_v56 = vpop.f32.mrb[17].mxu1 }
 0x8f4   :  { %v731_v57 = vpop.f32.mrb[18].mxu1 }
 0x8f5   :  { %v732_v58 = vadd.f32 %v2019_v53, %v731_v57  ;;  %v2222_v59 = vpop.f32.mrb[19].mxu1  ;;  %v736_v50 = vadd.f32 %v729_v55, %v2611_v36 }
 0x8f7   :  { %v738_v46 = vsel %vm64_vm0, %v736_v50, 0.0  ;;  %v737_v61 = vadd.f32 %v732_v58, %v2613_v37  ;;  %v2367_v37 = vld [vmem:[%s3011_s8] sm:$0xff]  }
 0x8f8   :  { %739 = vadd.xlane.f32.xlu1 %v738_v46  ;;  %2224 = vmatpush3.bf16.msra.mxu0 %v2367_v37 }
 0x8f9   :  { %v741_v62 = vsel %vm64_vm0, %v737_v61, 0.0  ;;  %2225 = vmatprep.subr.bf16.mxu0 %v2473_v15 }
 0x8fa   :  { %742 = vadd.xlane.f32.xlu0 %v741_v62 }
 0x8fc   :  { %2226 = vmatpush3.bf16.msra.mxu0 %v2368_v9 }
 0x8fd   :  { %2243 = vmatprep.subr.bf16.mxu0 %v2473_v15 }
 0x985   :  { %v740_v63 = vpop.xlane.xlu1 %739 }
 0x986   :  { %v744_v1 = vmul.f32 0.03125, %v740_v63 }
 0x987   :  { %v743_v2 = vpop.xlane.xlu0 %742 }
 0x988   :  { %v746_v3 = vsub.f32 %v736_v50, %v744_v1  ;;  %v745_v4 = vmul.f32 0.03125, %v743_v2  ;;  %v2027_v1 = vld [vmem:[%s3014_s11] ss:$0 sm:$0xff] }
 0x98a   :  { %v747_v5 = vsub.f32 %v737_v61, %v745_v4  ;;  %v748_v6 = vmul.f32 %v746_v3, %v746_v3 }
 0x98c   :  { %v750_v7 = vsel %vm64_vm0, %v748_v6, 0.0  ;;  %v749_v8 = vmul.f32 %v747_v5, %v747_v5 }
 0x98d   :  { %751 = vadd.xlane.f32.xlu0 %v750_v7 }
 0x98e   :  { %v753_v36 = vsel %vm64_vm0, %v749_v8, 0.0 }
 0x991   :  { %754 = vadd.xlane.f32.xlu0 %v753_v36 }
 0xa1a   :  { %v752_v10 = vpop.xlane.xlu0 %751 }
 0xa1b   :  { %v756_v11 = vmul.f32 0.03125, %v752_v10 }
 0xa1d   :  { %v758_v12 = vadd.f32 1e-12, %v756_v11 }
 0xa1e   :  { %v755_v13 = vpop.xlane.xlu0 %754 }
 0xa1f   :  { %2407 = vrsqrt.f32 %v758_v12  ;;  %v757_v14 = vmul.f32 0.03125, %v755_v13 }
 0xa21   :  { %v759_v16 = vadd.f32 1e-12, %v757_v14 }
 0xa23   :  { %2409 = vrsqrt.f32 %v759_v16 }
 0xa29   :  { %v2408_v18 = vpop.eup %2407 }
 0xa2a   :  { %v762_v19 = vmul.f32 %v2408_v18, %v746_v3 }
 0xa2c   :  { %v768_v21 = vmul.f32 %v767_v47, %v762_v19 }
 0xa2d   :  { %v2410_v20 = vpop.eup %2409 }
 0xa2e   :  { %v763_v22 = vmul.f32 %v2410_v20, %v747_v5  ;;  %v774_v26 = vadd.f32 %v773_v23, %v768_v21  ;;  %v2373_v20 = vld [vmem:[%s3006_s3 + $0x10] sm:$0xff]   ;;  %v2374_v21 = vld [vmem:[%s3006_s3 + $0x18] sm:$0xff]  }
 0xa30   :  { %v769_v24 = vmul.f32 %v767_v47, %v763_v22 }
 0xa32   :  { %v775_v27 = vadd.f32 %v773_v23, %v769_v24 }
 0xa34   :  { %v776_v28 = vpack.c.bf16 %v775_v27, %v774_v26 }
 0xa36   :  { %2228 = vmatmul.mubr.msk.bf16.vlgmr.msra.gmra.mrb[20].mxu0 %vm64_vm0, %v776_v28 }
 0xa37   :  { %2247 = vmatprep.mubr.msk.bf16.mxu0 %vm2474_vm1, %v2473_v15  ;;  %2244 = vmatpush3.bf16.msra.mxu0 %v2373_v20 }
 0xa38   :  { %2245 = vmatprep.subr.bf16.mxu0 %v2473_v15 }
 0xa3b   :  { %2246 = vmatpush3.bf16.msra.mxu0 %v2374_v21 }
 0xa3c   :  { %2251 = vmatprep.subr.bf16.mxu0 %v2473_v15 }
 0xb09   :  { %v837_v34 = vpop.f32.mrb[20].mxu0 }
 0xb0a   :  { %v838_v35 = vadd.f32 %v2023_v33, %v837_v34  ;;  %v2229_v38 = vpop.f32.mrb[21].mxu0 }
 0xb0b   :  { %v840_v39 = vpop.f32.mrb[22].mxu0  ;;  %v985_v38 = vrot.slane %v947_v44, %v2608_v30 }
 0xb0c   :  { %v846_v40 = vmul.f32 0.044715, %v838_v35  ;;  %v841_v41 = vadd.f32 %v2023_v33, %v840_v39  ;;  %v2230_v42 = vpop.f32.mrb[23].mxu0  ;;  %v844_v59 = vmul.f32 0.5, %v838_v35 }
 0xb0e   :  { %v848_v43 = vmul.f32 %v846_v40, %v838_v35  ;;  %v847_v45 = vmul.f32 0.044715, %v841_v41  ;;  %v845_v50 = vmul.f32 0.5, %v841_v41 }
 0xb10   :  { %v850_v48 = vmul.f32 %v848_v43, %v838_v35  ;;  %v849_v49 = vmul.f32 %v847_v45, %v841_v41  ;;  %v2038_v43 = vld [vmem:[%s3007_s4 + $0x1] ss:$0 sm:$0xff] }
 0xb12   :  { %v852_v51 = vadd.f32 %v850_v48, %v838_v35  ;;  %v851_v52 = vmul.f32 %v849_v49, %v841_v41 }
 0xb14   :  { %v854_v53 = vmul.f32 0.7978846, %v852_v51  ;;  %v853_v54 = vadd.f32 %v851_v52, %v841_v41 }
 0xb16   :  { %2411 = vtanh.f32 %v854_v53  ;;  %v855_v55 = vmul.f32 0.7978846, %v853_v54 }
 0xb18   :  { %2413 = vtanh.f32 %v855_v55 }
 0xb20   :  { %v2412_v56 = vpop.eup %2411 }
 0xb21   :  { %v858_v57 = vadd.f32 1.0, %v2412_v56 }
 0xb22   :  { %v2414_v58 = vpop.eup %2413 }
 0xb23   :  { %v859_v46 = vadd.f32 1.0, %v2414_v58  ;;  %v860_v61 = vmul.f32 %v858_v57, %v844_v59 }
 0xb25   :  { %v861_v62 = vmul.f32 %v859_v46, %v845_v50 }
 0xb27   :  { %v862_v63 = vpack.c.bf16 %v861_v62, %v860_v61 }
 0xb29   :  { %2240 = vmatmul.mubr.msk.bf16.vlgmr.msra.gmra.mrb[20].mxu1 %vm902_vm5, %v862_v63 }
 0xb2a   :  { %2259 = vmatprep.mubr.msk.bf16.mxu1 %vm2474_vm1, %v2473_v15 }
 0xbfc   :  { %v940_v2 = vpop.f32.mrb[20].mxu1 }
 0xbfd   :  { %v941_v3 = vadd.f32 %v2027_v1, %v940_v2  ;;  %v2241_v4 = vpop.f32.mrb[21].mxu1 }
 0xbfe   :  { %v943_v5 = vpop.f32.mrb[22].mxu1 }
 0xbff   :  { %v944_v6 = vadd.f32 %v2027_v1, %v943_v5  ;;  %v2242_v7 = vpop.f32.mrb[23].mxu1  ;;  %v948_v8 = vadd.f32 %v941_v3, %v774_v26 }
 0xc01   :  { %v950_v36 = vsel %vm64_vm0, %v948_v8, 0.0  ;;  %v949_v37 = vadd.f32 %v944_v6, %v775_v27 }
 0xc02   :  { %951 = vadd.xlane.f32.xlu1 %v950_v36 }
 0xc03   :  { %v953_v9 = vsel %vm64_vm0, %v949_v37, 0.0 }
 0xc04   :  { %954 = vadd.xlane.f32.xlu0 %v953_v9 }
 0xc8f   :  { %v952_v10 = vpop.xlane.xlu1 %951 }
 0xc90   :  { %v956_v11 = vmul.f32 0.03125, %v952_v10 }
 0xc91   :  { %v955_v12 = vpop.xlane.xlu0 %954 }
 0xc92   :  { %v958_v13 = vsub.f32 %v948_v8, %v956_v11  ;;  %v957_v14 = vmul.f32 0.03125, %v955_v12 }
 0xc94   :  { %v959_v16 = vsub.f32 %v949_v37, %v957_v14  ;;  %v960_v17 = vmul.f32 %v958_v13, %v958_v13 }
 0xc96   :  { %v962_v18 = vsel %vm64_vm0, %v960_v17, 0.0  ;;  %v961_v47 = vmul.f32 %v959_v16, %v959_v16 }
 0xc97   :  { %963 = vadd.xlane.f32.xlu1 %v962_v18 }
 0xc98   :  { %v965_v19 = vsel %vm64_vm0, %v961_v47, 0.0 }
 0xc99   :  { %966 = vadd.xlane.f32.xlu0 %v965_v19 }
 0xd24   :  { %v964_v22 = vpop.xlane.xlu1 %963 }
 0xd25   :  { %v968_v23 = vmul.f32 0.03125, %v964_v22 }
 0xd26   :  { %v967_v24 = vpop.xlane.xlu0 %966 }
 0xd27   :  { %v970_v26 = vadd.f32 1e-12, %v968_v23  ;;  %v969_v27 = vmul.f32 0.03125, %v967_v24 }
 0xd29   :  { %2415 = vrsqrt.f32 %v970_v26  ;;  %v971_v28 = vadd.f32 1e-12, %v969_v27 }
 0xd2b   :  { %2417 = vrsqrt.f32 %v971_v28 }
 0xd33   :  { %v2416_v31 = vpop.eup %2415 }
 0xd34   :  { %v974_v32 = vmul.f32 %v2416_v31, %v958_v13 }
 0xd35   :  { %v2418_v33 = vpop.eup %2417 }
 0xd36   :  { %v980_v34 = vmul.f32 %v979_v29, %v974_v32  ;;  %v975_v35 = vmul.f32 %v2418_v33, %v959_v16 }
 0xd38   :  { %v981_v39 = vmul.f32 %v979_v29, %v975_v35  ;;  %v2797_v40 = vadd.f32 %v985_v38, %v980_v34 }
 0xd3a   :  { %v2799_v41 = vadd.f32 %v985_v38, %v981_v39 }
 0xd3c   :  { %v988_v42 = vpack.c.bf16 %v2799_v41, %v2797_v40 }
 0xd3e   :  { %2248 = vmatmul.mubr.msk.bf16.vlgmr.msra.gmra.mrb[24].mxu0 %vm64_vm0, %v988_v42 }
 0xd3f   :  { %2253 = vmatprep.mubr.msk.bf16.mxu0 %vm2474_vm1, %v2473_v15 }
 0xe11   :  { %v1051_v45 = vpop.f32.mrb[24].mxu0 }
 0xe12   :  { %v1052_v48 = vadd.f32 %v2038_v43, %v1051_v45  ;;  %v2249_v49 = vpop.f32.mrb[25].mxu0 }
 0xe13   :  { %v1054_v51 = vpop.f32.mrb[26].mxu0 }
 0xe14   :  { %v2809_v52 = vpack.c.bf16 %v1052_v48, %v1052_v48  ;;  %v1055_v53 = vadd.f32 %v2038_v43, %v1054_v51  ;;  %v2250_v54 = vpop.f32.mrb[27].mxu0 }
 0xe16   :  { %v2811_v55 = vpack.c.bf16 %v1055_v53, %v1055_v53  ;;  %1061 = vrot.lane.b32.xlu1 %v2809_v52, %s2475_s26 }
 0xe18   :  { %1110 = vrot.lane.b32.xlu0 %v2811_v55, %s2475_s26 }
 0xe88   :  { %v1062_v56 = vpop.permute.xlu1 %1061 }
 0xe89   :  { %v1067_v57 = vsel %vm201_vm2, %v1062_v56, 0 }
 0xe8a   :  { %2252 = vmatpush3.bf16.xpose.msra.mxu0 %v1067_v57  ;;  %v1111_v58 = vpop.permute.xlu0 %1110 }
 0xe8b   :  { %v1116_v59 = vsel %vm201_vm2, %v1111_v58, 0  ;;  %2263 = vmatprep.subr.bf16.mxu0 %v2473_v15 }
 0xe8c   :  { %2258 = vmatpush3.bf16.xpose.msra.mxu1 %v1116_v59 }
 0xe8d   :  { %2269 = vmatprep.subr.bf16.mxu1 %v2473_v15 }
 0xe91   :  { %2254 = vmatmul.mubr.msk.bf16.vlgmr.msra.gmra.mrb[28].mxu0 %vm201_vm2, %v2809_v52 }
 0xe92   :  { %2265 = vmatprep.mubr.msk.bf16.mxu0 %vm2474_vm1, %v2473_v15 }
 0xe93   :  { %2260 = vmatmul.mubr.msk.bf16.vlgmr.msra.gmra.mrb[24].mxu1 %vm201_vm2, %v2811_v55 }
 0xe94   :  { %2271 = vmatprep.mubr.msk.bf16.mxu1 %vm2474_vm1, %v2473_v15 }
 0xf64   :  { %v1103_v50 = vpop.f32.mrb[28].mxu0 }
 0xf65   :  { %v1158_v46 = vmul.f32 0.25, %v1103_v50  ;;  %v2255_v61 = vpop.f32.mrb[29].mxu0 }
 0xf66   :  { %v1106_v62 = vpop.f32.mrb[30].mxu0  ;;  %v1152_v63 = vpop.f32.mrb[24].mxu1 }
 0xf67   :  { %v1159_v1 = vmul.f32 0.25, %v1152_v63  ;;  %v2256_v2 = vpop.f32.mrb[31].mxu0  ;;  %v2261_v3 = vpop.f32.mrb[25].mxu1  ;;  %v1160_v4 = vadd.f32 %v1158_v46, %v2647_v60 }
 0xf68   :  { %v1155_v5 = vpop.f32.mrb[26].mxu1 }
 0xf69   :  { %v2262_v6 = vpop.f32.mrb[27].mxu1  ;;  %v1162_v7 = vsel %vm311_vm3, %v1160_v4, -inf  ;;  %v1161_v8 = vadd.f32 %v1159_v1, %v2650_v0 }
 0xf6a   :  { %1163 = vmax.xlane.f32.xlu1 %v1162_v7 }
 0xf6b   :  { %v1165_v36 = vsel %vm311_vm3, %v1161_v8, -inf }
 0xf6c   :  { %1166 = vmax.xlane.f32.xlu0 %v1165_v36 }
 0xf7b   :  { %1186 = vrot.lane.b32.xlu1 %v2809_v52, %s2477_s30 }
 0xff7   :  { %v1164_v37 = vpop.xlane.xlu1 %1163 }
 0xff8   :  { %v1168_v9 = vsub.f32 %v1160_v4, %v1164_v37 }
 0xff9   :  { %v1167_v10 = vpop.xlane.xlu0 %1166 }
 0xffa   :  { %v1170_v11 = vmul.f32 1.442695, %v1168_v9  ;;  %v1169_v12 = vsub.f32 %v1161_v8, %v1167_v10 }
 0xffb   :  { %v1187_v13 = vpop.permute.xlu1 %1186 }
 0xffc   :  { %2419 = vpow2.f32 %v1170_v11  ;;  %v1172_v14 = vmul.f32 1.442695, %v1169_v12  ;;  %v1192_v16 = vsel %vm341_vm4, %v1187_v13, 0 }
 0xffd   :  { %2264 = vmatpush3.bf16.msra.mxu0 %v1192_v16 }
 0xffe   :  { %2421 = vpow2.f32 %v1172_v14  ;;  %2275 = vmatprep.subr.bf16.mxu0 %v2473_v15 }
0x1006   :  { %v2420_v17 = vpop.eup %2419 }
0x1007   :  { %v1174_v18 = vsel %vm311_vm3, %v2420_v17, 0.0 }
0x1008   :  { %v2422_v47 = vpop.eup %2421  ;;  %1175 = vadd.xlane.f32.xlu1 %v1174_v18 }
0x1009   :  { %v1177_v19 = vsel %vm311_vm3, %v2422_v47, 0.0 }
0x100a   :  { %1178 = vadd.xlane.f32.xlu0 %v1177_v19 }
0x1019   :  { %1284 = vrot.lane.b32.xlu1 %v2809_v52, %s2478_s0 }
0x101d   :  { %1334 = vrot.lane.b32.xlu1 %v2811_v55, %s2478_s0 }
0x1020   :  { %1234 = vrot.lane.b32.xlu0 %v2811_v55, %s2477_s30 }
0x1021   :  { %1282 = vrot.lane.b32.xlu1 %v2809_v52, %s2479_s19 }
0x1024   :  { %1332 = vrot.lane.b32.xlu0 %v2811_v55, %s2479_s19 }
0x1095   :  { %v1176_v20 = vpop.xlane.xlu1 %1175 }
0x1096   :  { %2423 = vrcp.f32 %v1176_v20 }
0x1097   :  { %v1179_v21 = vpop.xlane.xlu0 %1178 }
0x1098   :  { %2425 = vrcp.f32 %v1179_v21  ;;  %v2375_v21 = vld [vmem:[%s3008_s5 + $0x10] sm:$0xff]  }
0x1099   :  { %v1285_v24 = vpop.permute.xlu1 %1284 }
0x109a   :  { %v1290_v32 = vsel %vm201_vm2, %v1285_v24, 0 }
0x109b   :  { %v1235_v22 = vpop.permute.xlu0 %1234 }
0x109c   :  { %v1240_v23 = vsel %vm341_vm4, %v1235_v22, 0  ;;  %v2376_v22 = vld [vmem:[%s3008_s5 + $0x18] sm:$0xff]  }
0x109d   :  { %2270 = vmatpush3.bf16.msra.mxu1 %v1240_v23  ;;  %v1335_v31 = vpop.permute.xlu1 %1334 }
0x109e   :  { %2281 = vmatprep.subr.bf16.mxu1 %v2473_v15  ;;  %v1340_v34 = vsel %vm201_vm2, %v1335_v31, 0 }
0x109f   :  { %v1333_v38 = vpop.permute.xlu0 %1332 }
0x10a0   :  { %v2424_v26 = vpop.eup %2423 }
0x10a1   :  { %v1182_v27 = vmul.f32 %v2424_v26, %v2420_v17  ;;  %v1283_v35 = vpop.permute.xlu1 %1282 }
0x10a2   :  { %v2426_v28 = vpop.eup %2425 }
0x10a3   :  { %v1183_v44 = vmul.f32 %v2426_v28, %v2422_v47  ;;  %v1184_v29 = vpack.c.bf16 %v1182_v27, %v1182_v27 }
0x10a5   :  { %2266 = vmatmul.mubr.msk.bf16.vlgmr.msra.gmra.mrb[32].mxu0 %vm311_vm3, %v1184_v29  ;;  %v1185_v33 = vpack.c.bf16 %v1183_v44, %v1183_v44 }
0x10a6   :  { %2276 = vmatpush3.bf16.xpose.msra.mxu0 %v1290_v32  ;;  %2277 = vmatprep.mubr.msk.bf16.mxu0 %vm2474_vm1, %v2473_v15 }
0x10a7   :  { %2272 = vmatmul.mubr.msk.bf16.vlgmr.msra.gmra.mrb[28].mxu1 %vm311_vm3, %v1185_v33  ;;  %2287 = vmatprep.subr.bf16.mxu0 %v2473_v15 }
0x10a8   :  { %2282 = vmatpush3.bf16.xpose.msra.mxu1 %v1340_v34  ;;  %2283 = vmatprep.mubr.msk.bf16.mxu1 %vm2474_vm1, %v2473_v15 }
0x10a9   :  { %2293 = vmatprep.subr.bf16.mxu1 %v2473_v15 }
0x10ad   :  { %2278 = vmatmul.mubr.msk.bf16.vlgmr.msra.gmra.mrb[36].mxu0 %vm201_vm2, %v1283_v35 }
0x10ae   :  { %2289 = vmatprep.mubr.msk.bf16.mxu0 %vm2474_vm1, %v2473_v15 }
0x10af   :  { %2284 = vmatmul.mubr.msk.bf16.vlgmr.msra.gmra.mrb[32].mxu1 %vm201_vm2, %v1333_v38 }
0x10b0   :  { %2295 = vmatprep.mubr.msk.bf16.mxu1 %vm2474_vm1, %v2473_v15 }
0x1178   :  { %v2867_v39 = vpop.f32.mrb[32].mxu0 }
0x1179   :  { %v2267_v42 = vpop.f32.mrb[33].mxu0 }
0x117a   :  { %v1231_v43 = vpop.f32.mrb[34].mxu0  ;;  %v2869_v45 = vpop.f32.mrb[28].mxu1 }
0x117b   :  { %v2268_v48 = vpop.f32.mrb[35].mxu0  ;;  %v2273_v49 = vpop.f32.mrb[29].mxu1 }
0x117c   :  { %v1279_v51 = vpop.f32.mrb[30].mxu1  ;;  %v2055_v48 = vld [vmem:[%s3009_s6 + $0x1] ss:$0 sm:$0xff] }
0x117d   :  { %v2274_v53 = vpop.f32.mrb[31].mxu1 }
0x1180   :  { %v1326_v54 = vpop.f32.mrb[36].mxu0 }
0x1181   :  { %v1382_v56 = vmul.f32 0.25, %v1326_v54  ;;  %v2279_v57 = vpop.f32.mrb[37].mxu0 }
0x1182   :  { %v1329_v58 = vpop.f32.mrb[38].mxu0  ;;  %v1376_v59 = vpop.f32.mrb[32].mxu1 }
0x1183   :  { %v1383_v50 = vmul.f32 0.25, %v1376_v59  ;;  %v2280_v46 = vpop.f32.mrb[39].mxu0  ;;  %v2285_v61 = vpop.f32.mrb[33].mxu1  ;;  %v1384_v62 = vadd.f32 %v1382_v56, %v2647_v60 }
0x1184   :  { %v1379_v63 = vpop.f32.mrb[34].mxu1 }
0x1185   :  { %v2286_v1 = vpop.f32.mrb[35].mxu1  ;;  %v1386_v2 = vsel %vm311_vm3, %v1384_v62, -inf  ;;  %v1385_v3 = vadd.f32 %v1383_v50, %v2650_v0 }
0x1186   :  { %1387 = vmax.xlane.f32.xlu1 %v1386_v2 }
0x1187   :  { %v1389_v4 = vsel %vm311_vm3, %v1385_v3, -inf }
0x1188   :  { %1390 = vmax.xlane.f32.xlu0 %v1389_v4 }
0x1197   :  { %1410 = vrot.lane.b32.xlu1 %v2809_v52, %s2480_s1 }
0x1213   :  { %v1388_v5 = vpop.xlane.xlu1 %1387 }
0x1214   :  { %v1392_v6 = vsub.f32 %v1384_v62, %v1388_v5  ;;  %v2378_v5 = vld [vmem:[%s3011_s8 + $0x18] sm:$0xff]  }
0x1215   :  { %v1391_v7 = vpop.xlane.xlu0 %1390 }
0x1216   :  { %v1394_v8 = vmul.f32 1.442695, %v1392_v6  ;;  %v1393_v36 = vsub.f32 %v1385_v3, %v1391_v7 }
0x1217   :  { %v1411_v37 = vpop.permute.xlu1 %1410 }
0x1218   :  { %2427 = vpow2.f32 %v1394_v8  ;;  %v1396_v60 = vmul.f32 1.442695, %v1393_v36  ;;  %v1416_v9 = vsel %vm341_vm4, %v1411_v37, 0 }
0x1219   :  { %2288 = vmatpush3.bf16.msra.mxu0 %v1416_v9  ;;  %v2059_v9 = vld [vmem:[%s3010_s7 + $0x2] sm:$0x3] }
0x121a   :  { %2429 = vpow2.f32 %v1396_v60  ;;  %2299 = vmatprep.subr.bf16.mxu0 %v2473_v15 }
0x1222   :  { %v2428_v0 = vpop.eup %2427 }
0x1223   :  { %v1398_v10 = vsel %vm311_vm3, %v2428_v0, 0.0 }
0x1224   :  { %v2430_v11 = vpop.eup %2429  ;;  %1399 = vadd.xlane.f32.xlu0 %v1398_v10 }
0x1225   :  { %v1401_v52 = vsel %vm311_vm3, %v2430_v11, 0.0 }
0x1228   :  { %1402 = vadd.xlane.f32.xlu0 %v1401_v52 }
0x123e   :  { %1458 = vrot.lane.b32.xlu0 %v2811_v55, %s2480_s1 }
0x12b1   :  { %v1400_v12 = vpop.xlane.xlu0 %1399 }
0x12b2   :  { %2431 = vrcp.f32 %v1400_v12 }
0x12b5   :  { %v1403_v13 = vpop.xlane.xlu0 %1402 }
0x12b6   :  { %2433 = vrcp.f32 %v1403_v13 }
0x12b9   :  { %v1459_v14 = vpop.permute.xlu0 %1458 }
0x12ba   :  { %v1464_v16 = vsel %vm341_vm4, %v1459_v14, 0  ;;  %v1625_v14 = vrot.slane %v2059_v9, %v2608_v30 }
0x12bb   :  { %2294 = vmatpush3.bf16.msra.mxu1 %v1464_v16 }
0x12bc   :  { %v2432_v17 = vpop.eup %2431  ;;  %2307 = vmatprep.subr.bf16.mxu1 %v2473_v15 }
0x12bd   :  { %v1406_v18 = vmul.f32 %v2432_v17, %v2428_v0  ;;  %v1619_v0 = vrot.slane %v2059_v9, %v2602_v25 }
0x12bf   :  { %v1408_v47 = vpack.c.bf16 %v1406_v18, %v1406_v18 }
0x12c0   :  { %v2434_v19 = vpop.eup %2433 }
0x12c1   :  { %v1407_v20 = vmul.f32 %v2434_v19, %v2430_v11  ;;  %2290 = vmatmul.mubr.msk.bf16.vlgmr.msra.gmra.mrb[40].mxu0 %vm311_vm3, %v1408_v47  ;;  %v2379_v19 = vld [vmem:[%s3013_s10 + $0x20] sm:$0xff]  }
0x12c2   :  { %2303 = vmatprep.mubr.msk.bf16.mxu0 %vm2474_vm1, %v2473_v15  ;;  %2300 = vmatpush3.bf16.msra.mxu0 %v2375_v21  ;;  %v2382_v21 = vld [vmem:[%s3013_s10 + $0x38] sm:$0xff]  }
0x12c3   :  { %v1409_v55 = vpack.c.bf16 %v1407_v20, %v1407_v20  ;;  %2301 = vmatprep.subr.bf16.mxu0 %v2473_v15  ;;  %v2380_v20 = vld [vmem:[%s3013_s10 + $0x28] sm:$0xff]  }
0x12c5   :  { %2296 = vmatmul.mubr.msk.bf16.vlgmr.msra.gmra.mrb[36].mxu1 %vm311_vm3, %v1409_v55  ;;  %v2381_v55 = vld [vmem:[%s3013_s10 + $0x30] sm:$0xff]  }
0x12c6   :  { %2311 = vmatprep.mubr.msk.bf16.mxu1 %vm2474_vm1, %v2473_v15  ;;  %2302 = vmatpush3.bf16.msra.mxu0 %v2376_v22  ;;  %v2065_v22 = vld [vmem:[%s3012_s9 + $0x1] ss:$0 sm:$0xff] }
0x12c7   :  { %2315 = vmatprep.subr.bf16.mxu0 %v2473_v15 }
0x1394   :  { %v1452_v23 = vpop.f32.mrb[40].mxu0 }
0x1395   :  { %v2291_v24 = vpop.f32.mrb[41].mxu0 }
0x1396   :  { %v1455_v26 = vpop.f32.mrb[42].mxu0 }
0x1397   :  { %v2292_v27 = vpop.f32.mrb[43].mxu0 }
0x1398   :  { %v1500_v28 = vpop.f32.mrb[36].mxu1 }
0x1399   :  { %v2358_v44 = vpack.i.bf16 %v1500_v28, %v1452_v23  ;;  %v2297_v29 = vpop.f32.mrb[37].mxu1 }
0x139a   :  { %v1503_v31 = vpop.f32.mrb[38].mxu1 }
0x139b   :  { %v2298_v32 = vpop.f32.mrb[39].mxu1  ;;  %2359 = vrot.lane.b32.xlu1 %v2358_v44, %s2481_s23 }
0x140d   :  { %v2360_v33 = vpop.permute.xlu1 %2359 }
0x140e   :  { %v2362_v34 = vunpack.i.h.bf16 %v2360_v33  ;;  %v2361_v35 = vunpack.i.l.bf16 %v2360_v33 }
0x1410   :  { %v1515_v38 = vsel %vm201_vm2, %v2869_v45, %v2362_v34  ;;  %v1514_v42 = vsel %vm201_vm2, %v2867_v39, %v2361_v35 }
0x1411   :  { %v1516_v43 = vpack.c.bf16 %v1515_v38, %v1514_v42 }
0x1413   :  { %2304 = vmatmul.mubr.msk.bf16.vlgmr.msra.gmra.mrb[44].mxu0 %vm64_vm0, %v1516_v43 }
0x1414   :  { %2323 = vmatprep.mubr.msk.bf16.mxu0 %vm2474_vm1, %v2473_v15  ;;  %2316 = vmatpush3.bf16.msra.mxu0 %v2379_v19 }
0x1415   :  { %2317 = vmatprep.subr.bf16.mxu0 %v2473_v15 }
0x1418   :  { %2318 = vmatpush3.bf16.msra.mxu0 %v2380_v20 }
0x1419   :  { %2319 = vmatprep.subr.bf16.mxu0 %v2473_v15 }
0x141c   :  { %2320 = vmatpush3.bf16.msra.mxu0 %v2381_v55 }
0x141d   :  { %2321 = vmatprep.subr.bf16.mxu0 %v2473_v15 }
0x1420   :  { %2322 = vmatpush3.bf16.msra.mxu0 %v2382_v21 }
0x14e6   :  { %v1579_v49 = vpop.f32.mrb[44].mxu0 }
0x14e7   :  { %v1580_v51 = vadd.f32 %v2055_v48, %v1579_v49  ;;  %v2305_v53 = vpop.f32.mrb[45].mxu0 }
0x14e8   :  { %v1582_v54 = vpop.f32.mrb[46].mxu0 }
0x14e9   :  { %v1583_v56 = vadd.f32 %v2055_v48, %v1582_v54  ;;  %v2306_v57 = vpop.f32.mrb[47].mxu0  ;;  %v1588_v45 = vadd.f32 %v1580_v51, %v2797_v40 }
0x14eb   :  { %v1590_v39 = vsel %vm64_vm0, %v1588_v45, 0.0  ;;  %v1589_v58 = vadd.f32 %v1583_v56, %v2799_v41  ;;  %v2377_v41 = vld [vmem:[%s3011_s8 + $0x10] sm:$0xff]  }
0x14ec   :  { %1591 = vadd.xlane.f32.xlu1 %v1590_v39  ;;  %2308 = vmatpush3.bf16.msra.mxu1 %v2377_v41 }
0x14ed   :  { %v1593_v59 = vsel %vm64_vm0, %v1589_v58, 0.0  ;;  %2309 = vmatprep.subr.bf16.mxu1 %v2473_v15 }
0x14ee   :  { %1594 = vadd.xlane.f32.xlu0 %v1593_v59  ;;  %v2078_v59 = vld [vmem:[%s3014_s11 + $0x1] ss:$0 sm:$0xff] }
0x14f0   :  { %2310 = vmatpush3.bf16.msra.mxu1 %v2378_v5 }
0x14f1   :  { %2327 = vmatprep.subr.bf16.mxu1 %v2473_v15 }
0x1579   :  { %v1592_v50 = vpop.xlane.xlu1 %1591 }
0x157a   :  { %v1596_v46 = vmul.f32 0.03125, %v1592_v50 }
0x157b   :  { %v1595_v61 = vpop.xlane.xlu0 %1594 }
0x157c   :  { %v1598_v62 = vsub.f32 %v1588_v45, %v1596_v46  ;;  %v1597_v63 = vmul.f32 0.03125, %v1595_v61 }
0x157e   :  { %v1599_v1 = vsub.f32 %v1589_v58, %v1597_v63  ;;  %v1600_v2 = vmul.f32 %v1598_v62, %v1598_v62 }
0x1580   :  { %v1602_v3 = vsel %vm64_vm0, %v1600_v2, 0.0  ;;  %v1601_v4 = vmul.f32 %v1599_v1, %v1599_v1 }
0x1581   :  { %1603 = vadd.xlane.f32.xlu0 %v1602_v3 }
0x1582   :  { %v1605_v40 = vsel %vm64_vm0, %v1601_v4, 0.0 }
0x1583   :  { %1606 = vadd.xlane.f32.xlu1 %v1605_v40 }
0x160e   :  { %v1604_v6 = vpop.xlane.xlu0 %1603 }
0x160f   :  { %v1608_v7 = vmul.f32 0.03125, %v1604_v6 }
0x1610   :  { %v1607_v8 = vpop.xlane.xlu1 %1606 }
0x1611   :  { %v1610_v36 = vadd.f32 1e-12, %v1608_v7  ;;  %v1609_v37 = vmul.f32 0.03125, %v1607_v8 }
0x1613   :  { %2435 = vrsqrt.f32 %v1610_v36  ;;  %v1611_v60 = vadd.f32 1e-12, %v1609_v37 }
0x1615   :  { %2437 = vrsqrt.f32 %v1611_v60 }
0x161d   :  { %v2436_v10 = vpop.eup %2435 }
0x161e   :  { %v1614_v11 = vmul.f32 %v2436_v10, %v1598_v62  ;;  %v2383_v10 = vld [vmem:[%s3016_s13] sm:$0xff]  }
0x161f   :  { %v2438_v52 = vpop.eup %2437 }
0x1620   :  { %v1620_v12 = vmul.f32 %v1619_v0, %v1614_v11  ;;  %v1615_v13 = vmul.f32 %v2438_v52, %v1599_v1  ;;  %v2384_v11 = vld [vmem:[%s3016_s13 + $0x8] sm:$0xff]  }
0x1622   :  { %v1621_v16 = vmul.f32 %v1619_v0, %v1615_v13  ;;  %v1626_v17 = vadd.f32 %v1625_v14, %v1620_v12 }
0x1624   :  { %v1627_v18 = vadd.f32 %v1625_v14, %v1621_v16 }
0x1626   :  { %v1628_v47 = vpack.c.bf16 %v1627_v18, %v1626_v17 }
0x1628   :  { %2312 = vmatmul.mubr.msk.bf16.vlgmr.msra.gmra.mrb[40].mxu1 %vm64_vm0, %v1628_v47 }
0x1629   :  { %2331 = vmatprep.mubr.msk.bf16.mxu1 %vm2474_vm1, %v2473_v15  ;;  %2328 = vmatpush3.bf16.msra.mxu1 %v2383_v10 }
0x162a   :  { %2329 = vmatprep.subr.bf16.mxu1 %v2473_v15 }
0x162d   :  { %2330 = vmatpush3.bf16.msra.mxu1 %v2384_v11 }
0x162e   :  { %2335 = vmatprep.subr.bf16.mxu1 %v2473_v15 }
0x16fb   :  { %v1691_v23 = vpop.f32.mrb[40].mxu1 }
0x16fc   :  { %v1692_v24 = vadd.f32 %v2065_v22, %v1691_v23  ;;  %v2313_v26 = vpop.f32.mrb[41].mxu1 }
0x16fd   :  { %v1694_v27 = vpop.f32.mrb[42].mxu1 }
0x16fe   :  { %v1700_v28 = vmul.f32 0.044715, %v1692_v24  ;;  %v1695_v44 = vadd.f32 %v2065_v22, %v1694_v27  ;;  %v2314_v29 = vpop.f32.mrb[43].mxu1  ;;  %v1698_v54 = vmul.f32 0.5, %v1692_v24 }
0x1700   :  { %v1702_v31 = vmul.f32 %v1700_v28, %v1692_v24  ;;  %v1701_v32 = vmul.f32 0.044715, %v1695_v44  ;;  %v1699_v56 = vmul.f32 0.5, %v1695_v44 }
0x1702   :  { %v1704_v33 = vmul.f32 %v1702_v31, %v1692_v24  ;;  %v1703_v34 = vmul.f32 %v1701_v32, %v1695_v44 }
0x1704   :  { %v1706_v35 = vadd.f32 %v1704_v33, %v1692_v24  ;;  %v1705_v38 = vmul.f32 %v1703_v34, %v1695_v44 }
0x1706   :  { %v1708_v42 = vmul.f32 0.7978846, %v1706_v35  ;;  %v1707_v43 = vadd.f32 %v1705_v38, %v1695_v44  ;;  %v2085_v35 = vld [vmem:[%s3017_s14] ss:$0 sm:$0xff]  ;;  %s2482_s14 = smov [#allocation2]  }
0x1707   :  { %s1998_s7 = sshll.u32 %s2482_s14, 4  ;;  %s1999_s7 = int_to_ptr.vmem [resolvable:$true] %s1998_s7 }
0x1708   :  { %2439 = vtanh.f32 %v1708_v42  ;;  %v1709_v48 = vmul.f32 0.7978846, %v1707_v43  ;;  %p2454_p1 = scmp.lt.s32.totalorder %s1999_s7, %s1999_s7 }
0x170a   :  { %2441 = vtanh.f32 %v1709_v48 }
0x1712   :  { %v2440_v49 = vpop.eup %2439 }
0x1713   :  { %v1712_v51 = vadd.f32 1.0, %v2440_v49 }
0x1714   :  { %v2442_v53 = vpop.eup %2441 }
0x1715   :  { %v1713_v57 = vadd.f32 1.0, %v2442_v53  ;;  %v1714_v45 = vmul.f32 %v1712_v51, %v1698_v54  ;;  %v1921_v51 = vld [vmem:[%s3018_s15] sm:$0x3]  ;;  %s2449_s15 = scalar_lea.vmem %s1999_s7, 32 }
0x1716   :  { %p2450_p0 = scmp.ne.s32.totalorder %s1999_s7, %s2449_s15  ;;  %p2455_p2 = scmp.lt.s32.totalorder %s2449_s15, %s2449_s15 }
0x1717   :  { %v1715_v39 = vmul.f32 %v1713_v57, %v1699_v56  ;;  %v2089_v56 = vld [vmem:[%s3020_s17] ss:$0 sm:$0xff] }
0x1718   :  { %p2456_p3 = por %p2455_p2, %p2454_p1 }
0x1719   :  { %v1716_v58 = vpack.c.bf16 %v1715_v39, %v1714_v45 }
0x171a   :  { %p2457_p4 = pnand %p2456_p3, %p2450_p0 }
0x171b   :  { %2324 = vmatmul.mubr.msk.bf16.vlgmr.msra.gmra.mrb[48].mxu0 %vm902_vm5, %v1716_v58 }
0x17ee   :  { %v1795_v50 = vpop.f32.mrb[48].mxu0 }
0x17ef   :  { %v1796_v46 = vadd.f32 %v2078_v59, %v1795_v50  ;;  %v2325_v61 = vpop.f32.mrb[49].mxu0 }
0x17f0   :  { %v1798_v62 = vpop.f32.mrb[50].mxu0 }
0x17f1   :  { %v1799_v63 = vadd.f32 %v2078_v59, %v1798_v62  ;;  %v2326_v1 = vpop.f32.mrb[51].mxu0  ;;  %v1804_v2 = vadd.f32 %v1796_v46, %v1626_v17 }
0x17f3   :  { %v1806_v3 = vsel %vm64_vm0, %v1804_v2, 0.0  ;;  %v1805_v4 = vadd.f32 %v1799_v63, %v1627_v18  ;;  %v2084_v18 = vld [vmem:[%s3015_s12 + $0x2] sm:$0x3] }
0x17f4   :  { %1807 = vadd.xlane.f32.xlu1 %v1806_v3  ;;  %v1835_v47 = vrot.slane %v2084_v18, %v2602_v25  ;;  %v1841_v20 = vrot.slane %v2084_v18, %v2608_v30  ;;  %v2385_v25 = vld [vmem:[%s3019_s16] sm:$0xff]   ;;  %v2386_v30 = vld [vmem:[%s3019_s16 + $0x8] sm:$0xff]  }
0x17f5   :  { %v1809_v40 = vsel %vm64_vm0, %v1805_v4, 0.0 }
0x17f6   :  { %1810 = vadd.xlane.f32.xlu0 %v1809_v40 }
0x1881   :  { %v1808_v41 = vpop.xlane.xlu1 %1807 }
0x1882   :  { %v1812_v5 = vmul.f32 0.03125, %v1808_v41 }
0x1883   :  { %v1811_v6 = vpop.xlane.xlu0 %1810 }
0x1884   :  { %v1814_v7 = vsub.f32 %v1804_v2, %v1812_v5  ;;  %v1813_v8 = vmul.f32 0.03125, %v1811_v6 }
0x1886   :  { %v1815_v36 = vsub.f32 %v1805_v4, %v1813_v8  ;;  %v1816_v37 = vmul.f32 %v1814_v7, %v1814_v7 }
0x1888   :  { %v1818_v60 = vsel %vm64_vm0, %v1816_v37, 0.0  ;;  %v1817_v9 = vmul.f32 %v1815_v36, %v1815_v36 }
0x1889   :  { %1819 = vadd.xlane.f32.xlu1 %v1818_v60 }
0x188a   :  { %v1821_v0 = vsel %vm64_vm0, %v1817_v9, 0.0 }
0x188b   :  { %1822 = vadd.xlane.f32.xlu0 %v1821_v0 }
0x1916   :  { %v1820_v52 = vpop.xlane.xlu1 %1819 }
0x1917   :  { %v1824_v12 = vmul.f32 0.03125, %v1820_v52 }
0x1918   :  { %v1823_v13 = vpop.xlane.xlu0 %1822 }
0x1919   :  { %v1826_v14 = vadd.f32 1e-12, %v1824_v12  ;;  %v1825_v16 = vmul.f32 0.03125, %v1823_v13 }
0x191b   :  { %2443 = vrsqrt.f32 %v1826_v14  ;;  %v1827_v17 = vadd.f32 1e-12, %v1825_v16 }
0x191d   :  { %2445 = vrsqrt.f32 %v1827_v17 }
0x1925   :  { %v2444_v19 = vpop.eup %2443 }
0x1926   :  { %v1830_v55 = vmul.f32 %v2444_v19, %v1814_v7 }
0x1927   :  { %v2446_v21 = vpop.eup %2445 }
0x1928   :  { %v1836_v22 = vmul.f32 %v1835_v47, %v1830_v55  ;;  %v1831_v23 = vmul.f32 %v2446_v21, %v1815_v36 }
0x192a   :  { %v1842_v24 = vadd.f32 %v1841_v20, %v1836_v22  ;;  %v1837_v26 = vmul.f32 %v1835_v47, %v1831_v23 }
0x192c   :  { %v1843_v27 = vadd.f32 %v1841_v20, %v1837_v26  ;;  %v1844_v28 = vpack.c.bf16 %v1842_v24, %v1842_v24 }
0x192e   :  { %v1845_v44 = vpack.c.bf16 %v1843_v27, %v1843_v27  ;;  %v1859_v31 = vunpack.c.l.b16 %v1844_v28 }
0x1930   :  { %v1860_v29 = vunpack.c.l.b16 %v1845_v44 }
0x1932   :  { %v1861_v32 = vrot.slane %v1860_v29, 7 }
0x1934   :  { %v1863_v33 = vsel %vm1862_vm6, %v1861_v32, %v1859_v31 }
0x1935   :  { %v1864_v34 = vpack.c.b16 %v1863_v33, %v1863_v33 }
0x1937   :  { %2332 = vmatmul.mubr.msk.bf16.vlgmr.msra.gmra.mrb[44].mxu1 %vm64_vm0, %v1864_v34 }
0x1938   :  { %2339 = vmatprep.mubr.msk.bf16.mxu1 %vm2474_vm1, %v2473_v15  ;;  %2336 = vmatpush3.bf16.msra.mxu1 %v2385_v25 }
0x1939   :  { %2337 = vmatprep.subr.bf16.mxu1 %v2473_v15 }
0x193c   :  { %2338 = vmatpush3.bf16.msra.mxu1 %v2386_v30 }
0x1a0a   :  { %v1914_v38 = vpop.f32.mrb[44].mxu1 }
0x1a0b   :  { %v1915_v42 = vadd.f32 %v2085_v35, %v1914_v38  ;;  %v2333_v43 = vpop.f32.mrb[45].mxu1 }
0x1a0c   :  { %v1917_v48 = vpop.f32.mrb[46].mxu1 }
0x1a0d   :  { %2447 = vtanh.f32 %v1915_v42  ;;  %v2334_v49 = vpop.f32.mrb[47].mxu1 }
0x1a17   :  { %v2448_v15 = vpop.eup %2447 }
0x1a18   :  { %v1922_v53 = vmul.f32 %v2448_v15, %v1921_v51 }
0x1a1a   :  { %v1923_v54 = vpack.c.bf16 %v1922_v53, %v1922_v53 }
0x1a1c   :  { %2340 = vmatmul.mubr.msk.bf16.vlgmr.msra.gmra.mrb[48].mxu1 %vm64_vm0, %v1923_v54 }
0x1aef   :  { %v1984_v57 = vpop.f32.mrb[48].mxu1 }
0x1af0   :  { %v1985_v45 = vadd.f32 %v2089_v56, %v1984_v57  ;;  %v2341_v39 = vpop.f32.mrb[49].mxu1 }
0x1af1   :  { %v1987_v58 = vpop.f32.mrb[50].mxu1 }
0x1af2   :  { %v2342_v59 = vpop.f32.mrb[51].mxu1  ;;  %1991 = vst.msk [vmem:[#allocation2] sm:$0x3] %vm1990_vm7, %v1985_v45 }
0x1af3   :  { %2460 = shalt.err (!%p2457_p4)
}
0x1af4   :  { %s2461_s17 = scalar_lea.hbm %s3021_s18, 32 }
0x1af5   :  { %p2462_p5 = scmp.ne.s32.totalorder %s3021_s18, %s2461_s17  ;;  %p2465_p6 = scmp.lt.u32.totalorder %s2461_s17, %s3021_s18 }
0x1af7   :  { %p2467_p7 = pnand %p2465_p6, %p2462_p5 }
0x1af9   :  { %2470 = shalt.err (!%p2467_p7)
}
0x1afa   :  { %2001 = dma.vmem_to_hbm [thread:$0]  %s1999_s7, 32, %s3021_s18, [#allocation3]  }
0x1afb   :  { %2471 = dma.done.wait [#allocation3], 32  }
0x1afc   :  { %2472 = vsyncadd [#allocation3], 4294967264 }
0x1afd   :  { %2005 = vsyncpa [#allocation3], 1 }

</bundles_post_ra>
